<compile_context>
chip_gen: v6e
topology: v6e:2x2x1
jax: 0.10.0
libtpu: 0.0.40
codegen_flags: <defaults>
</compile_context>

<pallas_src>
import functools
import math

import jax
import jax.numpy as jnp
import numpy as np
from jax import lax
from jax.experimental import pallas as pl
from jax.experimental.pallas import tpu as pltpu

NBINS = 256  # torch.histc(bins=256) / torch.linspace(0, 1, 256)


# -----------------------------------------------------------------------------
# Morton (Z-order) layout maps: quadtree blocks become contiguous lane runs.
# -----------------------------------------------------------------------------
def _morton_maps(H, W):
    L = int(round(math.log2(H)))
    rr, cc = np.meshgrid(np.arange(H), np.arange(W), indexing="ij")
    morton = np.zeros((H, W), dtype=np.int64)
    for i in range(L):
        morton |= ((rr >> i) & 1) << (2 * i + 1)
        morton |= ((cc >> i) & 1) << (2 * i)
    morton_flat = morton.reshape(-1)            # Morton slot of each row-major pixel
    perm = np.argsort(morton_flat)              # row-major pixel stored at Morton slot z
    return perm.astype(np.int32), morton_flat.astype(np.int32)


# -----------------------------------------------------------------------------
# Pallas kernel (one image per grid step)
# -----------------------------------------------------------------------------
def _qt_kernel(xr_ref, xc_ref, o_ref, *, H, W, thresh, level, split_mode):
    # xr_ref: (1, N) image in Morton pixel order (lane-dense)
    # xc_ref: (N, 1) same data as a column (feeds the sublane axis of the
    #         pairwise bin-window matrix without an in-kernel transpose)
    # o_ref : (1, N) per-pixel block mean, Morton order, lane-dense
    N = H * W
    L = int(round(math.log2(H)))          # max quadtree depth (1x1 blocks)
    D = min(int(level), L)                # deepest depth the output can stop at
    f32 = jnp.float32

    xr = xr_ref[...].astype(f32)                                     # (1, N)
    lane = lax.broadcasted_iota(jnp.int32, (1, N), 1)                # pixel index

    # Hierarchical block sums in Morton order, kept in "broadcast back to every
    # pixel of the block" form.  Two butterfly steps (4 rolls + 2 selects + 2
    # adds) per depth transition; exact f32 adds, no matmul.  `rows` may carry
    # several independent (1, N) rows stacked on the sublane axis — they share
    # the same vregs, so the butterfly cost is independent of the row count.
    def block_sums(rows, depths):
        caps = {}
        if not depths:
            return caps
        if L in depths:
            caps[L] = rows                    # depth L: 1x1 blocks == pixels
        t = rows
        for step in range(2 * (L - min(depths))):
            m = 1 << step
            bit = (lane >> step) & 1
            fwd = pltpu.roll(t, N - m, axis=1)        # t[q + m] -> position q
            bwd = pltpu.roll(t, m, axis=1)            # t[q - m] -> position q
            t = t + jnp.where(bit == 0, fwd, bwd)     # sibling stays inside parent
            if step % 2 == 1:
                d = L - (step + 1) // 2
                if d in depths:
                    caps[d] = t
        return caps

    # depths whose split decision uses the entropy criterion
    # (root honours split_mode; every child always uses 'entropy')
    ent_depths = {d for d in range(D) if not (d == 0 and split_mode == "std")}
    need_depths = set(range(D + 1))

    if ent_depths:
        # torch.histc(bins=256, min=0, max=1) bin index of every pixel
        binr = jnp.clip(jnp.floor(xr * 256.0), 0.0, 255.0)           # (1, N)
        # per-pixel kde-tap weight (conv1d [1,1,1], pad=1); block sum == kde.sum()
        w_row = 3.0 - (binr == 0.0).astype(f32) - (binr == 255.0).astype(f32)
        # stack the image row and the weight row -> one shared butterfly pass
        rowsel = lax.broadcasted_iota(jnp.int32, (2, N), 0) == 0     # row 0 = x
        stacked = jnp.where(rowsel, xr, w_row)                       # (2, N)
        caps = block_sums(stacked, need_depths)
        xsums = {d: caps[d][0:1, :] for d in need_depths}
        wsums = {d: caps[d][1:2, :] for d in ent_depths}

        xc = xc_ref[...].astype(f32)                                 # (N, 1)
        binc = jnp.clip(jnp.floor(xc * 256.0), 0.0, 255.0)           # (N, 1)
        # torch.bucketize(x, linspace(0,1,256), right=False) == #{boundary < x}
        kcol = lax.broadcasted_iota(jnp.int32, (NBINS, 1), 0).astype(f32) * (1.0 / 255.0)
        idxr = jnp.sum((kcol < xr).astype(f32), axis=0, keepdims=True)   # (1, N)
        # A[p, q] = 1 iff pixel p's hist bin is within +-1 of pixel q's bucket
        # index.  0/1 values -> exact as a bf16 MXU operand.
        A = (jnp.abs(binc - idxr) <= 1.0).astype(jnp.bfloat16)       # (N, N)
    else:
        xsums = block_sums(xr, need_depths)

    # block means for every depth the output may stop at
    means = {d: xsums[d] * (1.0 / float(4 ** (L - d))) for d in range(D + 1)}

    def entropy_row(d):
        # per-block entropy at depth d, broadcast to pixels, as a (1, N) row
        shift = 2 * (L - d)                       # log2(pixels per block)
        G = N >> shift                            # number of blocks at depth d
        jcol = lax.broadcasted_iota(jnp.int32, (G, 1), 0)
        member = (lane >> shift) == jcol          # (G, N): pixel in block j?
        # unnormalized kde lookup for every (block, pixel-window) pair -> MXU
        U = jnp.dot(member.astype(jnp.bfloat16), A,
                    preferred_element_type=jnp.float32)              # (G, N)
        # select each pixel's own block (small G x N mask-reduce)
        u_row = jnp.sum(jnp.where(member, U, 0.0), axis=0, keepdims=True)
        val = u_row / wsums[d]                    # > 0 always (own bin is counted)
        t = val * jnp.log2(val)
        for step in range(shift):                 # block-sum of t up to depth d
            m = 1 << step
            bit = (lane >> step) & 1
            fwd = pltpu.roll(t, N - m, axis=1)
            bwd = pltpu.roll(t, m, axis=1)
            t = t + jnp.where(bit == 0, fwd, bwd)
        return -t

    out = means[0]
    still = None  # per-pixel: "the node containing this pixel keeps splitting"
    for d in range(D):
        if d == 0 and split_mode == "std":
            mu = jnp.sum(xr) * (1.0 / N)
            dev = xr - mu
            crit = jnp.zeros((1, N), f32) + jnp.sqrt(
                jnp.sum(dev * dev) * (1.0 / (N - 1)))      # unbiased std
        else:
            crit = entropy_row(d)
        go = crit >= thresh
        still = go if still is None else jnp.logical_and(still, go)
        out = jnp.where(still, means[d + 1], out)

    o_ref[...] = out.astype(o_ref.dtype)


# -----------------------------------------------------------------------------
# Wrapper (glue: static Morton permutation + reshapes only)
# -----------------------------------------------------------------------------
def qt_forward(x, *, thresh, level, split_mode="std"):
    assert split_mode in {"std", "entropy"}
    B, C, H, W = x.shape
    assert C >= 1
    assert H == W and (H & (H - 1)) == 0, "kernel assumes square power-of-two images"
    N = H * W

    perm, morton_flat = _morton_maps(H, W)
    x_flat = x[:, 0].reshape(B, N).astype(jnp.float32)
    x_m = jnp.take(x_flat, jnp.asarray(perm), axis=1)        # Morton order, (B, N)

    kernel = functools.partial(
        _qt_kernel, H=H, W=W, thresh=float(thresh), level=int(level),
        split_mode=split_mode)

    out_m = pl.pallas_call(
        kernel,
        out_shape=jax.ShapeDtypeStruct((B, 1, N), jnp.float32),
        grid=(B,),
        in_specs=[pl.BlockSpec((None, 1, N), lambda i: (i, 0, 0)),
                  pl.BlockSpec((None, N, 1), lambda i: (i, 0, 0))],
        out_specs=pl.BlockSpec((None, 1, N), lambda i: (i, 0, 0)),
        compiler_params=pltpu.CompilerParams(
            dimension_semantics=("parallel",),
            vmem_limit_bytes=32 << 20),
    )(x_m.reshape(B, 1, N), x_m.reshape(B, N, 1))

    out = jnp.take(out_m.reshape(B, N), jnp.asarray(morton_flat), axis=1)
    return out.reshape(B, 1, H, W)


# -----------------------------------------------------------------------------
# NumPy reference (direct port of the torch module) for validation
# -----------------------------------------------------------------------------
_BOUNDS = np.arange(NBINS, dtype=np.float32) * np.float32(1.0 / 255.0)


def _ref_get_kde(img):
    flat = img.reshape(-1)
    b = np.clip(np.floor(flat * 256.0), 0, 255).astype(np.int64)
    bins = np.bincount(b, minlength=NBINS).astype(np.float64)
    padded = np.concatenate([[0.0], bins, [0.0]])
    kde = padded[:-2] + padded[1:-1] + padded[2:]      # conv1d with [1,1,1], pad=1
    return kde / kde.sum()


def _ref_criterion(img, split_mode):
    if split_mode == "std":
        return float(img.std(ddof=1))
    kde = _ref_get_kde(img)
    idx = np.searchsorted(_BOUNDS, img.reshape(-1), side="left")  # bucketize right=False
    xv = kde[idx]
    return float(-(xv * np.log2(xv)).sum())


def _ref_insert(img, level, thresh, split_mode):
    node = {"level": level, "mean": float(img.mean()), "res": img.shape, "leaf": True}
    h, w = img.shape
    if (h > 1 or w > 1) and _ref_criterion(img, split_mode) >= thresh:
        node["leaf"] = False
        hh, wh = h // 2, w // 2
        node["children"] = [
            _ref_insert(img[:hh, :wh], level + 1, thresh, "entropy"),
            _ref_insert(img[:hh, wh:], level + 1, thresh, "entropy"),
            _ref_insert(img[hh:, :wh], level + 1, thresh, "entropy"),
            _ref_insert(img[hh:, wh:], level + 1, thresh, "entropy"),
        ]
    return node


def _ref_get_image(node, level):
    if node["leaf"] or node["level"] == level:
        return np.full(node["res"], node["mean"], dtype=np.float32)
    nw, ne, sw, se = (_ref_get_image(c, level) for c in node["children"])
    top = np.concatenate([nw, ne], axis=1)
    bot = np.concatenate([sw, se], axis=1)
    return np.concatenate([top, bot], axis=0)


def _ref_forward(x, thresh, level, split_mode):
    outs = []
    for i in range(x.shape[0]):
        tree = _ref_insert(np.asarray(x[i, 0], dtype=np.float32), 0, thresh, split_mode)
        outs.append(_ref_get_image(tree, level)[None, None])
    return np.concatenate(outs, axis=0)


# -----------------------------------------------------------------------------
if __name__ == "__main__":
    key = jax.random.PRNGKey(0)
    B, C, H, W = 2, 1, 16, 16
    x = jax.random.uniform(key, (B, C, H, W), dtype=jnp.float32)  # values in [0, 1]

    # QT(thresh=0.2, default_level=2) with the module's default split_mode='std'
    y_std = jax.block_until_ready(qt_forward(x, thresh=0.2, level=2, split_mode="std"))
    # also exercise the 'entropy' root criterion / deeper truncation level
    y_ent = jax.block_until_ready(qt_forward(x, thresh=3.0, level=3, split_mode="entropy"))

    x_np = np.asarray(x)
    np.testing.assert_allclose(np.asarray(y_std), _ref_forward(x_np, 0.2, 2, "std"),
                               rtol=1e-5, atol=1e-5)
    np.testing.assert_allclose(np.asarray(y_ent), _ref_forward(x_np, 3.0, 3, "entropy"),
                               rtol=1e-5, atol=1e-5)
    print("KERNEL_OK")
</pallas_src>

<mosaic_0001>
module attributes {stable_mosaic.version = 11 : i64} {
  func.func @_qt_kernel(%arg0: i32, %arg1: memref<1x1x256xf32, #tpu.memory_space<vmem>>, %arg2: memref<1x256x1xf32, #tpu.memory_space<vmem>>, %arg3: memref<1x1x256xf32, #tpu.memory_space<vmem>>) attributes {dimension_semantics = [#tpu.dimension_semantics<parallel>], iteration_bounds = array<i64: 2>, scalar_prefetch = 0 : i64, scratch_operands = 0 : i64, tpu.core_type = #tpu.core_type<tc>, window_params = [{transform_indices = @transform_0, window_bounds = array<i64: 1, 1, 256>}, {transform_indices = @transform_1, window_bounds = array<i64: 1, 256, 1>}, {transform_indices = @transform_2, window_bounds = array<i64: 1, 1, 256>}]} {
    %c0 = arith.constant 0 : index
    %c0_0 = arith.constant 0 : index
    %c0_1 = arith.constant 0 : index
    %0 = vector.load %arg1[%c0, %c0_0, %c0_1] : memref<1x1x256xf32, #tpu.memory_space<vmem>>, vector<1x1x256xf32>
    %1 = vector.shape_cast %0 : vector<1x1x256xf32> to vector<1x256xf32>
    %2 = tpu.iota {dimensions = array<i32: 1>} : vector<1x256xi32>
    %cst = arith.constant 2.560000e+02 : f32
    %3 = vector.broadcast %cst : f32 to vector<1x256xf32>
    %4 = arith.mulf %1, %3 : vector<1x256xf32>
    %5 = math.floor %4 : vector<1x256xf32>
    %cst_2 = arith.constant 0.000000e+00 : f32
    %cst_3 = arith.constant 2.550000e+02 : f32
    %6 = vector.broadcast %cst_2 : f32 to vector<1x256xf32>
    %7 = arith.maximumf %6, %5 : vector<1x256xf32>
    %8 = vector.broadcast %cst_3 : f32 to vector<1x256xf32>
    %9 = arith.minimumf %8, %7 : vector<1x256xf32>
    %cst_4 = arith.constant 0.000000e+00 : f32
    %10 = vector.broadcast %cst_4 : f32 to vector<1x256xf32>
    %11 = arith.cmpf oeq, %9, %10 : vector<1x256xf32>
    %12 = arith.extui %11 : vector<1x256xi1> to vector<1x256xi32>
    %13 = arith.sitofp %12 : vector<1x256xi32> to vector<1x256xf32>
    %cst_5 = arith.constant 3.000000e+00 : f32
    %14 = vector.broadcast %cst_5 : f32 to vector<1x256xf32>
    %15 = arith.subf %14, %13 : vector<1x256xf32>
    %cst_6 = arith.constant 2.550000e+02 : f32
    %16 = vector.broadcast %cst_6 : f32 to vector<1x256xf32>
    %17 = arith.cmpf oeq, %9, %16 : vector<1x256xf32>
    %18 = arith.extui %17 : vector<1x256xi1> to vector<1x256xi32>
    %19 = arith.sitofp %18 : vector<1x256xi32> to vector<1x256xf32>
    %20 = arith.subf %15, %19 : vector<1x256xf32>
    %21 = tpu.iota {dimensions = array<i32: 0>} : vector<2x256xi32>
    %c0_i32 = arith.constant 0 : i32
    %22 = vector.broadcast %c0_i32 : i32 to vector<2x256xi32>
    %23 = arith.cmpi eq, %21, %22 : vector<2x256xi32>
    %24 = vector.shape_cast %1 : vector<1x256xf32> to vector<1x256xf32>
    %25 = vector.broadcast %24 : vector<1x256xf32> to vector<2x256xf32>
    %26 = vector.shape_cast %20 : vector<1x256xf32> to vector<1x256xf32>
    %27 = vector.broadcast %26 : vector<1x256xf32> to vector<2x256xf32>
    %28 = arith.select %23, %25, %27 : vector<2x256xi1>, vector<2x256xf32>
    %c0_i32_7 = arith.constant 0 : i32
    %29 = vector.broadcast %c0_i32_7 : i32 to vector<1x256xi32>
    %30 = arith.shrsi %2, %29 : vector<1x256xi32>
    %c1_i32 = arith.constant 1 : i32
    %31 = vector.broadcast %c1_i32 : i32 to vector<1x256xi32>
    %32 = arith.andi %30, %31 : vector<1x256xi32>
    %c255_i32 = arith.constant 255 : i32
    %33 = tpu.dynamic_rotate %28 by %c255_i32 dim 1 : vector<2x256xf32>, i32 -> vector<2x256xf32>
    %c1_i32_8 = arith.constant 1 : i32
    %34 = tpu.dynamic_rotate %28 by %c1_i32_8 dim 1 : vector<2x256xf32>, i32 -> vector<2x256xf32>
    %c0_i32_9 = arith.constant 0 : i32
    %35 = vector.broadcast %c0_i32_9 : i32 to vector<1x256xi32>
    %36 = arith.cmpi eq, %32, %35 : vector<1x256xi32>
    %37 = vector.shape_cast %36 : vector<1x256xi1> to vector<1x256xi1>
    %38 = vector.broadcast %37 : vector<1x256xi1> to vector<2x256xi1>
    %39 = arith.select %38, %33, %34 : vector<2x256xi1>, vector<2x256xf32>
    %40 = arith.addf %28, %39 : vector<2x256xf32>
    %c1_i32_10 = arith.constant 1 : i32
    %41 = vector.broadcast %c1_i32_10 : i32 to vector<1x256xi32>
    %42 = arith.shrsi %2, %41 : vector<1x256xi32>
    %c1_i32_11 = arith.constant 1 : i32
    %43 = vector.broadcast %c1_i32_11 : i32 to vector<1x256xi32>
    %44 = arith.andi %42, %43 : vector<1x256xi32>
    %c254_i32 = arith.constant 254 : i32
    %45 = tpu.dynamic_rotate %40 by %c254_i32 dim 1 : vector<2x256xf32>, i32 -> vector<2x256xf32>
    %c2_i32 = arith.constant 2 : i32
    %46 = tpu.dynamic_rotate %40 by %c2_i32 dim 1 : vector<2x256xf32>, i32 -> vector<2x256xf32>
    %c0_i32_12 = arith.constant 0 : i32
    %47 = vector.broadcast %c0_i32_12 : i32 to vector<1x256xi32>
    %48 = arith.cmpi eq, %44, %47 : vector<1x256xi32>
    %49 = vector.shape_cast %48 : vector<1x256xi1> to vector<1x256xi1>
    %50 = vector.broadcast %49 : vector<1x256xi1> to vector<2x256xi1>
    %51 = arith.select %50, %45, %46 : vector<2x256xi1>, vector<2x256xf32>
    %52 = arith.addf %40, %51 : vector<2x256xf32>
    %c2_i32_13 = arith.constant 2 : i32
    %53 = vector.broadcast %c2_i32_13 : i32 to vector<1x256xi32>
    %54 = arith.shrsi %2, %53 : vector<1x256xi32>
    %c1_i32_14 = arith.constant 1 : i32
    %55 = vector.broadcast %c1_i32_14 : i32 to vector<1x256xi32>
    %56 = arith.andi %54, %55 : vector<1x256xi32>
    %c252_i32 = arith.constant 252 : i32
    %57 = tpu.dynamic_rotate %52 by %c252_i32 dim 1 : vector<2x256xf32>, i32 -> vector<2x256xf32>
    %c4_i32 = arith.constant 4 : i32
    %58 = tpu.dynamic_rotate %52 by %c4_i32 dim 1 : vector<2x256xf32>, i32 -> vector<2x256xf32>
    %c0_i32_15 = arith.constant 0 : i32
    %59 = vector.broadcast %c0_i32_15 : i32 to vector<1x256xi32>
    %60 = arith.cmpi eq, %56, %59 : vector<1x256xi32>
    %61 = vector.shape_cast %60 : vector<1x256xi1> to vector<1x256xi1>
    %62 = vector.broadcast %61 : vector<1x256xi1> to vector<2x256xi1>
    %63 = arith.select %62, %57, %58 : vector<2x256xi1>, vector<2x256xf32>
    %64 = arith.addf %52, %63 : vector<2x256xf32>
    %c3_i32 = arith.constant 3 : i32
    %65 = vector.broadcast %c3_i32 : i32 to vector<1x256xi32>
    %66 = arith.shrsi %2, %65 : vector<1x256xi32>
    %c1_i32_16 = arith.constant 1 : i32
    %67 = vector.broadcast %c1_i32_16 : i32 to vector<1x256xi32>
    %68 = arith.andi %66, %67 : vector<1x256xi32>
    %c248_i32 = arith.constant 248 : i32
    %69 = tpu.dynamic_rotate %64 by %c248_i32 dim 1 : vector<2x256xf32>, i32 -> vector<2x256xf32>
    %c8_i32 = arith.constant 8 : i32
    %70 = tpu.dynamic_rotate %64 by %c8_i32 dim 1 : vector<2x256xf32>, i32 -> vector<2x256xf32>
    %c0_i32_17 = arith.constant 0 : i32
    %71 = vector.broadcast %c0_i32_17 : i32 to vector<1x256xi32>
    %72 = arith.cmpi eq, %68, %71 : vector<1x256xi32>
    %73 = vector.shape_cast %72 : vector<1x256xi1> to vector<1x256xi1>
    %74 = vector.broadcast %73 : vector<1x256xi1> to vector<2x256xi1>
    %75 = arith.select %74, %69, %70 : vector<2x256xi1>, vector<2x256xf32>
    %76 = arith.addf %64, %75 : vector<2x256xf32>
    %c4_i32_18 = arith.constant 4 : i32
    %77 = vector.broadcast %c4_i32_18 : i32 to vector<1x256xi32>
    %78 = arith.shrsi %2, %77 : vector<1x256xi32>
    %c1_i32_19 = arith.constant 1 : i32
    %79 = vector.broadcast %c1_i32_19 : i32 to vector<1x256xi32>
    %80 = arith.andi %78, %79 : vector<1x256xi32>
    %c240_i32 = arith.constant 240 : i32
    %81 = tpu.dynamic_rotate %76 by %c240_i32 dim 1 : vector<2x256xf32>, i32 -> vector<2x256xf32>
    %c16_i32 = arith.constant 16 : i32
    %82 = tpu.dynamic_rotate %76 by %c16_i32 dim 1 : vector<2x256xf32>, i32 -> vector<2x256xf32>
    %c0_i32_20 = arith.constant 0 : i32
    %83 = vector.broadcast %c0_i32_20 : i32 to vector<1x256xi32>
    %84 = arith.cmpi eq, %80, %83 : vector<1x256xi32>
    %85 = vector.shape_cast %84 : vector<1x256xi1> to vector<1x256xi1>
    %86 = vector.broadcast %85 : vector<1x256xi1> to vector<2x256xi1>
    %87 = arith.select %86, %81, %82 : vector<2x256xi1>, vector<2x256xf32>
    %88 = arith.addf %76, %87 : vector<2x256xf32>
    %c5_i32 = arith.constant 5 : i32
    %89 = vector.broadcast %c5_i32 : i32 to vector<1x256xi32>
    %90 = arith.shrsi %2, %89 : vector<1x256xi32>
    %c1_i32_21 = arith.constant 1 : i32
    %91 = vector.broadcast %c1_i32_21 : i32 to vector<1x256xi32>
    %92 = arith.andi %90, %91 : vector<1x256xi32>
    %c224_i32 = arith.constant 224 : i32
    %93 = tpu.dynamic_rotate %88 by %c224_i32 dim 1 : vector<2x256xf32>, i32 -> vector<2x256xf32>
    %c32_i32 = arith.constant 32 : i32
    %94 = tpu.dynamic_rotate %88 by %c32_i32 dim 1 : vector<2x256xf32>, i32 -> vector<2x256xf32>
    %c0_i32_22 = arith.constant 0 : i32
    %95 = vector.broadcast %c0_i32_22 : i32 to vector<1x256xi32>
    %96 = arith.cmpi eq, %92, %95 : vector<1x256xi32>
    %97 = vector.shape_cast %96 : vector<1x256xi1> to vector<1x256xi1>
    %98 = vector.broadcast %97 : vector<1x256xi1> to vector<2x256xi1>
    %99 = arith.select %98, %93, %94 : vector<2x256xi1>, vector<2x256xf32>
    %100 = arith.addf %88, %99 : vector<2x256xf32>
    %c6_i32 = arith.constant 6 : i32
    %101 = vector.broadcast %c6_i32 : i32 to vector<1x256xi32>
    %102 = arith.shrsi %2, %101 : vector<1x256xi32>
    %c1_i32_23 = arith.constant 1 : i32
    %103 = vector.broadcast %c1_i32_23 : i32 to vector<1x256xi32>
    %104 = arith.andi %102, %103 : vector<1x256xi32>
    %c192_i32 = arith.constant 192 : i32
    %105 = tpu.dynamic_rotate %100 by %c192_i32 dim 1 : vector<2x256xf32>, i32 -> vector<2x256xf32>
    %c64_i32 = arith.constant 64 : i32
    %106 = tpu.dynamic_rotate %100 by %c64_i32 dim 1 : vector<2x256xf32>, i32 -> vector<2x256xf32>
    %c0_i32_24 = arith.constant 0 : i32
    %107 = vector.broadcast %c0_i32_24 : i32 to vector<1x256xi32>
    %108 = arith.cmpi eq, %104, %107 : vector<1x256xi32>
    %109 = vector.shape_cast %108 : vector<1x256xi1> to vector<1x256xi1>
    %110 = vector.broadcast %109 : vector<1x256xi1> to vector<2x256xi1>
    %111 = arith.select %110, %105, %106 : vector<2x256xi1>, vector<2x256xf32>
    %112 = arith.addf %100, %111 : vector<2x256xf32>
    %c7_i32 = arith.constant 7 : i32
    %113 = vector.broadcast %c7_i32 : i32 to vector<1x256xi32>
    %114 = arith.shrsi %2, %113 : vector<1x256xi32>
    %c1_i32_25 = arith.constant 1 : i32
    %115 = vector.broadcast %c1_i32_25 : i32 to vector<1x256xi32>
    %116 = arith.andi %114, %115 : vector<1x256xi32>
    %c128_i32 = arith.constant 128 : i32
    %117 = tpu.dynamic_rotate %112 by %c128_i32 dim 1 : vector<2x256xf32>, i32 -> vector<2x256xf32>
    %c128_i32_26 = arith.constant 128 : i32
    %118 = tpu.dynamic_rotate %112 by %c128_i32_26 dim 1 : vector<2x256xf32>, i32 -> vector<2x256xf32>
    %c0_i32_27 = arith.constant 0 : i32
    %119 = vector.broadcast %c0_i32_27 : i32 to vector<1x256xi32>
    %120 = arith.cmpi eq, %116, %119 : vector<1x256xi32>
    %121 = vector.shape_cast %120 : vector<1x256xi1> to vector<1x256xi1>
    %122 = vector.broadcast %121 : vector<1x256xi1> to vector<2x256xi1>
    %123 = arith.select %122, %117, %118 : vector<2x256xi1>, vector<2x256xf32>
    %124 = arith.addf %112, %123 : vector<2x256xf32>
    %125 = vector.extract_strided_slice %124 {offsets = [0, 0], sizes = [1, 256], strides = [1, 1]} : vector<2x256xf32> to vector<1x256xf32>
    %126 = vector.extract_strided_slice %100 {offsets = [0, 0], sizes = [1, 256], strides = [1, 1]} : vector<2x256xf32> to vector<1x256xf32>
    %127 = vector.extract_strided_slice %76 {offsets = [0, 0], sizes = [1, 256], strides = [1, 1]} : vector<2x256xf32> to vector<1x256xf32>
    %128 = vector.extract_strided_slice %100 {offsets = [1, 0], sizes = [1, 256], strides = [1, 1]} : vector<2x256xf32> to vector<1x256xf32>
    %c0_28 = arith.constant 0 : index
    %c0_29 = arith.constant 0 : index
    %c0_30 = arith.constant 0 : index
    %129 = vector.load %arg2[%c0_28, %c0_29, %c0_30] : memref<1x256x1xf32, #tpu.memory_space<vmem>>, vector<1x256x1xf32>
    %130 = vector.shape_cast %129 : vector<1x256x1xf32> to vector<256x1xf32>
    %cst_31 = arith.constant 2.560000e+02 : f32
    %131 = vector.broadcast %cst_31 : f32 to vector<256x1xf32>
    %132 = arith.mulf %130, %131 : vector<256x1xf32>
    %133 = math.floor %132 : vector<256x1xf32>
    %cst_32 = arith.constant 0.000000e+00 : f32
    %cst_33 = arith.constant 2.550000e+02 : f32
    %134 = vector.broadcast %cst_32 : f32 to vector<256x1xf32>
    %135 = arith.maximumf %134, %133 : vector<256x1xf32>
    %136 = vector.broadcast %cst_33 : f32 to vector<256x1xf32>
    %137 = arith.minimumf %136, %135 : vector<256x1xf32>
    %138 = tpu.iota {dimensions = array<i32: 0>} : vector<256x1xi32>
    %139 = arith.sitofp %138 : vector<256x1xi32> to vector<256x1xf32>
    %cst_34 = arith.constant 0.00392156886 : f32
    %140 = vector.broadcast %cst_34 : f32 to vector<256x1xf32>
    %141 = arith.mulf %139, %140 : vector<256x1xf32>
    %142 = vector.broadcast %141 : vector<256x1xf32> to vector<256x256xf32>
    %143 = vector.broadcast %1 : vector<1x256xf32> to vector<256x256xf32>
    %144 = arith.cmpf olt, %142, %143 : vector<256x256xf32>
    %145 = arith.extui %144 : vector<256x256xi1> to vector<256x256xi32>
    %146 = arith.sitofp %145 : vector<256x256xi32> to vector<256x256xf32>
    %cst_35 = arith.constant dense<0.000000e+00> : vector<256xf32>
    %147 = vector.multi_reduction <add>, %146, %cst_35 [0] : vector<256x256xf32> to vector<256xf32>
    %148 = vector.shape_cast %147 : vector<256xf32> to vector<1x256xf32>
    %149 = vector.broadcast %137 : vector<256x1xf32> to vector<256x256xf32>
    %150 = vector.broadcast %148 : vector<1x256xf32> to vector<256x256xf32>
    %151 = arith.subf %149, %150 : vector<256x256xf32>
    %152 = math.absf %151 : vector<256x256xf32>
    %cst_36 = arith.constant 1.000000e+00 : f32
    %153 = vector.broadcast %cst_36 : f32 to vector<256x256xf32>
    %154 = arith.cmpf ole, %152, %153 : vector<256x256xf32>
    %155 = arith.extui %154 : vector<256x256xi1> to vector<256x256xi32>
    %156 = arith.sitofp %155 : vector<256x256xi32> to vector<256x256xf32>
    %157 = arith.truncf %156 : vector<256x256xf32> to vector<256x256xbf16>
    %cst_37 = arith.constant 3.906250e-03 : f32
    %158 = vector.broadcast %cst_37 : f32 to vector<1x256xf32>
    %159 = arith.mulf %125, %158 : vector<1x256xf32>
    %cst_38 = arith.constant 1.562500e-02 : f32
    %160 = vector.broadcast %cst_38 : f32 to vector<1x256xf32>
    %161 = arith.mulf %126, %160 : vector<1x256xf32>
    %cst_39 = arith.constant 6.250000e-02 : f32
    %162 = vector.broadcast %cst_39 : f32 to vector<1x256xf32>
    %163 = arith.mulf %127, %162 : vector<1x256xf32>
    %164 = vector.shape_cast %1 : vector<1x256xf32> to vector<1x1x256xf32>
    %cst_40 = arith.constant dense<0.000000e+00> : vector<1xf32>
    %165 = vector.multi_reduction <add>, %164, %cst_40 [1, 2] : vector<1x1x256xf32> to vector<1xf32>
    %166 = vector.shape_cast %165 : vector<1xf32> to vector<1x1x1xf32>
    %167 = vector.extract %166[0, 0, 0] : f32 from vector<1x1x1xf32>
    %cst_41 = arith.constant 3.906250e-03 : f32
    %168 = arith.mulf %167, %cst_41 : f32
    %169 = vector.broadcast %168 : f32 to vector<1x256xf32>
    %170 = arith.subf %1, %169 : vector<1x256xf32>
    %cst_42 = arith.constant 0.000000e+00 : f32
    %171 = vector.broadcast %cst_42 : f32 to vector<1x256xf32>
    %172 = arith.mulf %170, %170 : vector<1x256xf32>
    %173 = vector.shape_cast %172 : vector<1x256xf32> to vector<1x1x256xf32>
    %cst_43 = arith.constant dense<0.000000e+00> : vector<1xf32>
    %174 = vector.multi_reduction <add>, %173, %cst_43 [1, 2] : vector<1x1x256xf32> to vector<1xf32>
    %175 = vector.shape_cast %174 : vector<1xf32> to vector<1x1x1xf32>
    %176 = vector.extract %175[0, 0, 0] : f32 from vector<1x1x1xf32>
    %cst_44 = arith.constant 0.00392156886 : f32
    %177 = arith.mulf %176, %cst_44 : f32
    %178 = math.sqrt %177 : f32
    %179 = vector.broadcast %178 : f32 to vector<1x256xf32>
    %180 = arith.addf %171, %179 : vector<1x256xf32>
    %cst_45 = arith.constant 2.000000e-01 : f32
    %181 = vector.broadcast %cst_45 : f32 to vector<1x256xf32>
    %182 = arith.cmpf oge, %180, %181 : vector<1x256xf32>
    %183 = arith.select %182, %161, %159 : vector<1x256xi1>, vector<1x256xf32>
    %184 = tpu.iota {dimensions = array<i32: 0>} : vector<4x1xi32>
    %c6_i32_46 = arith.constant 6 : i32
    %185 = vector.broadcast %c6_i32_46 : i32 to vector<1x256xi32>
    %186 = arith.shrsi %2, %185 : vector<1x256xi32>
    %187 = vector.broadcast %186 : vector<1x256xi32> to vector<4x256xi32>
    %188 = vector.broadcast %184 : vector<4x1xi32> to vector<4x256xi32>
    %189 = arith.cmpi eq, %187, %188 : vector<4x256xi32>
    %190 = arith.extui %189 : vector<4x256xi1> to vector<4x256xi32>
    %191 = arith.sitofp %190 : vector<4x256xi32> to vector<4x256xf32>
    %192 = arith.truncf %191 : vector<4x256xf32> to vector<4x256xbf16>
    %cst_47 = arith.constant dense<0.000000e+00> : vector<4x256xf32>
    %193 = tpu.matmul %192, %157, %cst_47 {dimension_numbers = #tpu.dot_dimension_numbers<[1], [0], [0], [1], [0, 0, 1, 1], [], []>} : vector<4x256xbf16>, vector<256x256xbf16>, vector<4x256xf32> -> vector<4x256xf32>
    %cst_48 = arith.constant 0.000000e+00 : f32
    %194 = vector.broadcast %cst_48 : f32 to vector<4x256xf32>
    %195 = arith.select %189, %193, %194 : vector<4x256xi1>, vector<4x256xf32>
    %cst_49 = arith.constant dense<0.000000e+00> : vector<256xf32>
    %196 = vector.multi_reduction <add>, %195, %cst_49 [0] : vector<4x256xf32> to vector<256xf32>
    %197 = vector.shape_cast %196 : vector<256xf32> to vector<1x256xf32>
    %198 = arith.divf %197, %128 : vector<1x256xf32>
    %199 = math.log %198 : vector<1x256xf32>
    %cst_50 = arith.constant 2.000000e+00 : f32
    %200 = math.log %cst_50 : f32
    %201 = vector.broadcast %200 : f32 to vector<1x256xf32>
    %202 = arith.divf %199, %201 : vector<1x256xf32>
    %203 = arith.mulf %198, %202 : vector<1x256xf32>
    %c0_i32_51 = arith.constant 0 : i32
    %204 = vector.broadcast %c0_i32_51 : i32 to vector<1x256xi32>
    %205 = arith.shrsi %2, %204 : vector<1x256xi32>
    %c1_i32_52 = arith.constant 1 : i32
    %206 = vector.broadcast %c1_i32_52 : i32 to vector<1x256xi32>
    %207 = arith.andi %205, %206 : vector<1x256xi32>
    %c255_i32_53 = arith.constant 255 : i32
    %208 = tpu.dynamic_rotate %203 by %c255_i32_53 dim 1 : vector<1x256xf32>, i32 -> vector<1x256xf32>
    %c1_i32_54 = arith.constant 1 : i32
    %209 = tpu.dynamic_rotate %203 by %c1_i32_54 dim 1 : vector<1x256xf32>, i32 -> vector<1x256xf32>
    %c0_i32_55 = arith.constant 0 : i32
    %210 = vector.broadcast %c0_i32_55 : i32 to vector<1x256xi32>
    %211 = arith.cmpi eq, %207, %210 : vector<1x256xi32>
    %212 = arith.select %211, %208, %209 : vector<1x256xi1>, vector<1x256xf32>
    %213 = arith.addf %203, %212 : vector<1x256xf32>
    %c1_i32_56 = arith.constant 1 : i32
    %214 = vector.broadcast %c1_i32_56 : i32 to vector<1x256xi32>
    %215 = arith.shrsi %2, %214 : vector<1x256xi32>
    %c1_i32_57 = arith.constant 1 : i32
    %216 = vector.broadcast %c1_i32_57 : i32 to vector<1x256xi32>
    %217 = arith.andi %215, %216 : vector<1x256xi32>
    %c254_i32_58 = arith.constant 254 : i32
    %218 = tpu.dynamic_rotate %213 by %c254_i32_58 dim 1 : vector<1x256xf32>, i32 -> vector<1x256xf32>
    %c2_i32_59 = arith.constant 2 : i32
    %219 = tpu.dynamic_rotate %213 by %c2_i32_59 dim 1 : vector<1x256xf32>, i32 -> vector<1x256xf32>
    %c0_i32_60 = arith.constant 0 : i32
    %220 = vector.broadcast %c0_i32_60 : i32 to vector<1x256xi32>
    %221 = arith.cmpi eq, %217, %220 : vector<1x256xi32>
    %222 = arith.select %221, %218, %219 : vector<1x256xi1>, vector<1x256xf32>
    %223 = arith.addf %213, %222 : vector<1x256xf32>
    %c2_i32_61 = arith.constant 2 : i32
    %224 = vector.broadcast %c2_i32_61 : i32 to vector<1x256xi32>
    %225 = arith.shrsi %2, %224 : vector<1x256xi32>
    %c1_i32_62 = arith.constant 1 : i32
    %226 = vector.broadcast %c1_i32_62 : i32 to vector<1x256xi32>
    %227 = arith.andi %225, %226 : vector<1x256xi32>
    %c252_i32_63 = arith.constant 252 : i32
    %228 = tpu.dynamic_rotate %223 by %c252_i32_63 dim 1 : vector<1x256xf32>, i32 -> vector<1x256xf32>
    %c4_i32_64 = arith.constant 4 : i32
    %229 = tpu.dynamic_rotate %223 by %c4_i32_64 dim 1 : vector<1x256xf32>, i32 -> vector<1x256xf32>
    %c0_i32_65 = arith.constant 0 : i32
    %230 = vector.broadcast %c0_i32_65 : i32 to vector<1x256xi32>
    %231 = arith.cmpi eq, %227, %230 : vector<1x256xi32>
    %232 = arith.select %231, %228, %229 : vector<1x256xi1>, vector<1x256xf32>
    %233 = arith.addf %223, %232 : vector<1x256xf32>
    %c3_i32_66 = arith.constant 3 : i32
    %234 = vector.broadcast %c3_i32_66 : i32 to vector<1x256xi32>
    %235 = arith.shrsi %2, %234 : vector<1x256xi32>
    %c1_i32_67 = arith.constant 1 : i32
    %236 = vector.broadcast %c1_i32_67 : i32 to vector<1x256xi32>
    %237 = arith.andi %235, %236 : vector<1x256xi32>
    %c248_i32_68 = arith.constant 248 : i32
    %238 = tpu.dynamic_rotate %233 by %c248_i32_68 dim 1 : vector<1x256xf32>, i32 -> vector<1x256xf32>
    %c8_i32_69 = arith.constant 8 : i32
    %239 = tpu.dynamic_rotate %233 by %c8_i32_69 dim 1 : vector<1x256xf32>, i32 -> vector<1x256xf32>
    %c0_i32_70 = arith.constant 0 : i32
    %240 = vector.broadcast %c0_i32_70 : i32 to vector<1x256xi32>
    %241 = arith.cmpi eq, %237, %240 : vector<1x256xi32>
    %242 = arith.select %241, %238, %239 : vector<1x256xi1>, vector<1x256xf32>
    %243 = arith.addf %233, %242 : vector<1x256xf32>
    %c4_i32_71 = arith.constant 4 : i32
    %244 = vector.broadcast %c4_i32_71 : i32 to vector<1x256xi32>
    %245 = arith.shrsi %2, %244 : vector<1x256xi32>
    %c1_i32_72 = arith.constant 1 : i32
    %246 = vector.broadcast %c1_i32_72 : i32 to vector<1x256xi32>
    %247 = arith.andi %245, %246 : vector<1x256xi32>
    %c240_i32_73 = arith.constant 240 : i32
    %248 = tpu.dynamic_rotate %243 by %c240_i32_73 dim 1 : vector<1x256xf32>, i32 -> vector<1x256xf32>
    %c16_i32_74 = arith.constant 16 : i32
    %249 = tpu.dynamic_rotate %243 by %c16_i32_74 dim 1 : vector<1x256xf32>, i32 -> vector<1x256xf32>
    %c0_i32_75 = arith.constant 0 : i32
    %250 = vector.broadcast %c0_i32_75 : i32 to vector<1x256xi32>
    %251 = arith.cmpi eq, %247, %250 : vector<1x256xi32>
    %252 = arith.select %251, %248, %249 : vector<1x256xi1>, vector<1x256xf32>
    %253 = arith.addf %243, %252 : vector<1x256xf32>
    %c5_i32_76 = arith.constant 5 : i32
    %254 = vector.broadcast %c5_i32_76 : i32 to vector<1x256xi32>
    %255 = arith.shrsi %2, %254 : vector<1x256xi32>
    %c1_i32_77 = arith.constant 1 : i32
    %256 = vector.broadcast %c1_i32_77 : i32 to vector<1x256xi32>
    %257 = arith.andi %255, %256 : vector<1x256xi32>
    %c224_i32_78 = arith.constant 224 : i32
    %258 = tpu.dynamic_rotate %253 by %c224_i32_78 dim 1 : vector<1x256xf32>, i32 -> vector<1x256xf32>
    %c32_i32_79 = arith.constant 32 : i32
    %259 = tpu.dynamic_rotate %253 by %c32_i32_79 dim 1 : vector<1x256xf32>, i32 -> vector<1x256xf32>
    %c0_i32_80 = arith.constant 0 : i32
    %260 = vector.broadcast %c0_i32_80 : i32 to vector<1x256xi32>
    %261 = arith.cmpi eq, %257, %260 : vector<1x256xi32>
    %262 = arith.select %261, %258, %259 : vector<1x256xi1>, vector<1x256xf32>
    %263 = arith.addf %253, %262 : vector<1x256xf32>
    %cst_81 = arith.constant 0.000000e+00 : f32
    %264 = vector.broadcast %cst_81 : f32 to vector<1x256xf32>
    %265 = arith.subf %264, %263 : vector<1x256xf32>
    %cst_82 = arith.constant 2.000000e-01 : f32
    %266 = vector.broadcast %cst_82 : f32 to vector<1x256xf32>
    %267 = arith.cmpf oge, %265, %266 : vector<1x256xf32>
    %268 = arith.andi %182, %267 : vector<1x256xi1>
    %269 = arith.select %268, %163, %183 : vector<1x256xi1>, vector<1x256xf32>
    %c0_83 = arith.constant 0 : index
    %c0_84 = arith.constant 0 : index
    %c0_85 = arith.constant 0 : index
    %270 = vector.load %arg3[%c0_83, %c0_84, %c0_85] : memref<1x1x256xf32, #tpu.memory_space<vmem>>, vector<1x1x256xf32>
    %271 = vector.shape_cast %270 : vector<1x1x256xf32> to vector<1x256xf32>
    %272 = vector.shape_cast %269 : vector<1x256xf32> to vector<1x1x256xf32>
    tpu.vector_store %arg3[%c0_83, %c0_84, %c0_85], %272 {strides = array<i32>} : memref<1x1x256xf32, #tpu.memory_space<vmem>>, vector<1x1x256xf32>,
    return
  }
  func.func @transform_0(%arg0: i32) -> (i32, i32, i32) {
    %c0_i32 = arith.constant 0 : i32
    %c0_i32_0 = arith.constant 0 : i32
    %c0_i32_1 = arith.constant 0 : i32
    return %arg0, %c0_i32, %c0_i32_0 : i32, i32, i32
  }
  func.func @transform_1(%arg0: i32) -> (i32, i32, i32) {
    %c0_i32 = arith.constant 0 : i32
    %c0_i32_0 = arith.constant 0 : i32
    %c0_i32_1 = arith.constant 0 : i32
    return %arg0, %c0_i32, %c0_i32_0 : i32, i32, i32
  }
  func.func @transform_2(%arg0: i32) -> (i32, i32, i32) {
    %c0_i32 = arith.constant 0 : i32
    %c0_i32_0 = arith.constant 0 : i32
    %c0_i32_1 = arith.constant 0 : i32
    return %arg0, %c0_i32, %c0_i32_0 : i32, i32, i32
  }
}

</mosaic_0001>

<bundles_post_ra>
// kernel: tpu_custom_call.1
= control target key start
LH: loop header
LB: loop body
LE: loop exit
PB: predicated region body
PF: predicated region fallthrough
CT: control target
= control target key end

     0   :  { %7 = vsyncpa [#allocation3], 0  ;;  %s3303_s0 = inlined_call_operand.vmem [shape: f32[2,1,256], index: 0, kind: input, shape index: {}]   ;;  %s3304_s1 = inlined_call_operand.vmem [shape: f32[2,256,1], index: 1, kind: input, shape index: {}]   ;;  %s3305_s2 = inlined_call_operand.hbm [shape: f32[2,1,256], index: 2, kind: output, shape index: {}]  }
   0x1   :  { %9 = vsyncpa [#allocation3 + $0x1], 0  ;;  %s2245_s9 = smov 0   ;;  %s2247_s10 = smov 0  }
   0x2   :  { %s2249_s11 = smov 0   ;;  %s2251_s12 = smov 0  }
   0x3 LB: > { %s2266_s13 = sadd.s32 4294967295, %s2210_s12   ;;  %s1860_s14 = sadd.s32 4294967294, %s2210_s12   ;;  %s2210_s12 = sphi %s2251_s12, %s3347_s12   ;;  %s2206_s11 = sphi %s2249_s11, %s3346_s11   ;;  %s2202_s10 = sphi %s2247_s10, %s3345_s10   ;;  %s2198_s9 = sphi %s2245_s9, %s3344_s9  }
   0x4   : > { %s2270_s15 = sadd.s32 1, %s2210_s12   ;;  %s74_s16 = sadd.s32 1, %s2206_s11 }
   0x5   : > { %s71_s17 = ssub.s32 %s2210_s12, %s2270_s15  ;;  %p84_p0 = scmp.ne.s32.totalorder %s2206_s11, %s2202_s10 }
   0x6   : > { %p72_p1 = scmp.eq.s32.totalorder %s71_s17, 0  ;;  %p85_p2 = scmp.eq.s32.totalorder %s2266_s13, 1 }
   0x7   : > { %p90_p3 = scmp.ne.s32.totalorder %s2202_s10, %s2198_s9  ;;  %p91_p4 = scmp.eq.s32.totalorder %s1860_s14, 1 }
   0x8   : > { %s2281_s18 = scalar_select %p72_p1, %s2206_s11, %s74_s16  }
   0x9   : > { %p2283_p5 = por %p85_p2, %p84_p0  ;;  %p2287_p6 = por %p91_p4, %p90_p3 }
   0xa   : > { %p1863_p7 = scmp.ge.s32.totalorder %s2210_s12, 1  ;;  %p124_p8 = scmp.lt.s32.totalorder %s2210_s12, 3 }
   0xc   : > { %p125_p9 = pnand %p1863_p7, %p124_p8 }
   0xd   : > { %p150_p10 = scmp.lt.s32.totalorder (!%p125_p9), %s2266_s13, 1  ;;  %s2214_s30 = smov (!%p125_p9), 1  }
   0xe   : > { %128 = sbr.rel (%p125_p9) target bundleno = 1633 (0x661), region = 28  ;;  %s2215_s3 = smov (!%p125_p9), 127  }
   0xf   : > { %s2216_s4 = smov (!%p125_p9), 126   ;;  %s2217_s5 = smov (!%p125_p9), 2  }
  0x10   : > { %s2219_s6 = smov (!%p125_p9), 124   ;;  %s2220_s7 = smov (!%p125_p9), 4  }
  0x11   : > { %s2221_s8 = smov (!%p125_p9), 120   ;;  %s2222_s14 = smov (!%p125_p9), 8  }
  0x12   : > { %s2223_s16 = smov (!%p125_p9), 112   ;;  %s2224_s17 = smov (!%p125_p9), 16  }
  0x13   : > { %v2212_v0 = vmov 0   ;;  %s151_s21 = scalar_select %p150_p10, %s2266_s13, 1  ;;  %v160_v2 = vlaneseq  ;;  %v2213_v11 = vmov 0.0  }
  0x14   : > { %2138 = vset.pattern.permute.xlu1 %v2212_v0  ;;  %2137 = vset.pattern.permute.xlu0 %v2212_v0  ;;  %s2227_s27 = smov 64  }
  0x15   : > { %s1865_s22 = sshll.u32 %s151_s21, 1  ;;  %s2073_s26 = sshll.u32 %s151_s21, 8  ;;  %v2307_v6 = vshrl.u32 %v160_v2, 7 }
  0x16   : > { %s2298_s25 = scalar_lea.vmem %s3303_s0, %s1865_s22  ;;  %s2304_s29 = scalar_lea.vmem %s3304_s1, %s2073_s26 }
  0x17   : > { %v159_v1 = vld [vmem:[%s2298_s25] sm:$0x3]  ;;  %v405_v8 = vld [vmem:[%s2304_s29 + $0x78] sm:$0xff]  ;;  %v404_v9 = vld [vmem:[%s2304_s29 + $0x70] sm:$0xff]  ;;  %v2312_v10 = vsub.s32 0, %v2307_v6  ;;  %v2318_v18 = vsub.s32 1, %v2307_v6 }
  0x18   : > { %v163_v3 = vmul.f32 256.0, %v159_v1  ;;  %v437_v14 = vmul.f32 256.0, %v405_v8  ;;  %v436_v15 = vmul.f32 256.0, %v404_v9  ;;  %v402_v16 = vld [vmem:[%s2304_s29 + $0x60] sm:$0xff]  ;;  %v403_v19 = vld [vmem:[%s2304_s29 + $0x68] sm:$0xff]  ;;  %vm177_vm2 = vcmp.eq.s32.totalorder %v2307_v6, 0 }
  0x19   : > { %v2322_v21 = vrot.slane %v159_v1, %v2312_v10  ;;  %v434_v22 = vmul.f32 256.0, %v402_v16  ;;  %v435_v25 = vmul.f32 256.0, %v403_v19  ;;  %v400_v26 = vld [vmem:[%s2304_s29 + $0x50] sm:$0xff]  ;;  %v401_v27 = vld [vmem:[%s2304_s29 + $0x58] sm:$0xff]  ;;  %v2329_v29 = vrot.slane %v159_v1, %v2318_v18  ;;  %v398_v38 = vld [vmem:[%s2304_s29 + $0x40] sm:$0xff]  ;;  %s2225_s21 = smov 96  }
  0x1a   : > { %v164_v4 = vfloor.f32 %v163_v3  ;;  %v469_v23 = vfloor.f32 %v437_v14  ;;  %v468_v24 = vfloor.f32 %v436_v15  ;;  %v432_v33 = vmul.f32 256.0, %v400_v26  ;;  %v399_v40 = vld [vmem:[%s2304_s29 + $0x48] sm:$0xff]  ;;  %v396_v49 = vld [vmem:[%s2304_s29 + $0x30] sm:$0xff]  ;;  %v397_v50 = vld [vmem:[%s2304_s29 + $0x38] sm:$0xff]  ;;  %s2226_s22 = smov 32  }
  0x1b   : > { %v466_v32 = vfloor.f32 %v434_v22  ;;  %v433_v34 = vmul.f32 256.0, %v401_v27  ;;  %v467_v37 = vfloor.f32 %v435_v25  ;;  %v430_v44 = vmul.f32 256.0, %v398_v38  ;;  %v395_v9 = vld [vmem:[%s2304_s29 + $0x28] sm:$0xff]  ;;  %v392_v14 = vld [vmem:[%s2304_s29 + $0x10] sm:$0xff] }
  0x1c   : > { %v165_v5 = vmax.f32 %v164_v4, 0.0  ;;  %v501_v35 = vmax.f32 %v469_v23, 0.0  ;;  %v500_v36 = vmax.f32 %v468_v24, 0.0  ;;  %v464_v42 = vfloor.f32 %v432_v33  ;;  %v391_v23 = vld [vmem:[%s2304_s29 + $0x8] sm:$0xff]  ;;  %v390_v24 = vld [vmem:[%s2304_s29] sm:$0xff] }
  0x1d   : > { %v498_v41 = vmax.f32 %v466_v32, 0.0  ;;  %v465_v43 = vfloor.f32 %v433_v34  ;;  %v499_v47 = vmax.f32 %v467_v37, 0.0  ;;  %v431_v48 = vmul.f32 256.0, %v399_v40 }
  0x1e   : > { %v166_v7 = vmin.f32 %v165_v5, 255.0  ;;  %v533_v45 = vmin.f32 %v501_v35, 255.0  ;;  %v532_v46 = vmin.f32 %v500_v36, 255.0  ;;  %v496_v52 = vmax.f32 %v464_v42, 0.0 }
  0x1f   : > { %v530_v51 = vmin.f32 %v498_v41, 255.0  ;;  %v497_v53 = vmax.f32 %v465_v43, 0.0  ;;  %v462_v54 = vfloor.f32 %v430_v44  ;;  %v531_v55 = vmin.f32 %v499_v47, 255.0  ;;  %v421_v43 = vld [vmem:[%s2304_s29 + $0xf8] sm:$0xff] }
  0x20   : > { %vm167_vm0 = vcmp.eq.f32.partialorder %v166_v7, 0.0  ;;  %vm171_vm1 = vcmp.eq.f32.partialorder %v166_v7, 255.0  ;;  %v463_v56 = vfloor.f32 %v431_v48  ;;  %v428_v57 = vmul.f32 256.0, %v396_v49 }
  0x21   : > { %v1868_v12 = vsel %vm167_vm0, 1.0, %v2213_v11  ;;  %v1869_v13 = vsel %vm171_vm1, 1.0, %v2213_v11  ;;  %v429_v58 = vmul.f32 256.0, %v397_v50  ;;  %v528_v59 = vmin.f32 %v496_v52, 255.0 }
  0x22   : > { %v170_v17 = vsub.f32 3.0, %v1868_v12  ;;  %v494_v60 = vmax.f32 %v462_v54, 0.0  ;;  %v529_v61 = vmin.f32 %v497_v53, 255.0  ;;  %v495_v62 = vmax.f32 %v463_v56, 0.0  ;;  %v394_v12 = vld [vmem:[%s2304_s29 + $0x20] sm:$0xff] }
  0x23   : > { %v460_v63 = vfloor.f32 %v428_v57  ;;  %v461_v0 = vfloor.f32 %v429_v58  ;;  %v427_v15 = vmul.f32 256.0, %v395_v9  ;;  %v426_v16 = vmul.f32 256.0, %v394_v12 }
  0x24   : > { %v174_v20 = vsub.f32 %v170_v17, %v1869_v13  ;;  %v526_v1 = vmin.f32 %v494_v60, 255.0  ;;  %v527_v3 = vmin.f32 %v495_v62, 255.0  ;;  %v393_v13 = vld [vmem:[%s2304_s29 + $0x18] sm:$0xff]  ;;  %v2359_v19 = vand.u32 127, %v160_v2 }
  0x25   : > { %v492_v4 = vmax.f32 %v460_v63, 0.0  ;;  %v493_v5 = vmax.f32 %v461_v0, 0.0  ;;  %v425_v17 = vmul.f32 256.0, %v393_v13  ;;  %v459_v22 = vfloor.f32 %v427_v15 }
  0x26   : > { %v193_v28 = vrot.slane %v174_v20, %v2312_v10  ;;  %v197_v30 = vrot.slane %v174_v20, %v2318_v18  ;;  %v424_v20 = vmul.f32 256.0, %v392_v14  ;;  %v458_v25 = vfloor.f32 %v426_v16 }
  0x27   : > { %v524_v7 = vmin.f32 %v492_v4, 255.0  ;;  %v525_v8 = vmin.f32 %v493_v5, 255.0  ;;  %v457_v26 = vfloor.f32 %v425_v17  ;;  %v2364_v27 = vadd.s32 128, %v2359_v19 }
  0x28   : > { %v2335_v31 = vsel %vm177_vm2, %v2322_v21, %v193_v28  ;;  %v2345_v39 = vsel %vm177_vm2, %v2329_v29, %v197_v30  ;;  %v456_v28 = vfloor.f32 %v424_v20  ;;  %v423_v30 = vmul.f32 256.0, %v391_v23 }
  0x29   : > { %211 = vrot.lane.b32.xlu1 %v2335_v31, %s2214_s30  ;;  %204 = vrot.lane.b32.xlu0 %v2335_v31, %s2215_s3  ;;  %v422_v32 = vmul.f32 256.0, %v390_v24  ;;  %v2366_v33 = vmax.f32 %v459_v22, 0.0  ;;  %v550_v34 = vadd.s32 8, %v2307_v6  ;;  %v551_v35 = vadd.s32 16, %v2307_v6 }
  0x2a   : > { %v202_v36 = vand.u32 1, %v2359_v19  ;;  %v2371_v37 = vmax.f32 %v458_v25, 0.0  ;;  %v2373_v38 = vmax.f32 %v457_v26, 0.0  ;;  %v581_v40 = vcvt.s32.f32 %v2307_v6 }
  0x2b   : > { %v203_v41 = vand.u32 1, %v2364_v27  ;;  %v2377_v42 = vmax.f32 %v456_v28, 0.0  ;;  %v552_v44 = vadd.s32 24, %v2307_v6  ;;  %v454_v47 = vfloor.f32 %v422_v32 }
  0x2c   : > { %v554_v48 = vadd.s32 40, %v2307_v6  ;;  %v555_v49 = vadd.s32 48, %v2307_v6  ;;  %v523_v50 = vmin.f32 %v2366_v33, 255.0  ;;  %v556_v52 = vadd.s32 56, %v2307_v6 }
  0x2d   : > { %213 = vrot.lane.b32.xlu1 %v2345_v39, %s2214_s30  ;;  %206 = vrot.lane.b32.xlu0 %v2345_v39, %s2215_s3  ;;  %v557_v53 = vadd.s32 64, %v2307_v6  ;;  %v582_v54 = vcvt.s32.f32 %v550_v34  ;;  %v521_v56 = vmin.f32 %v2373_v38, 255.0  ;;  %v2390_v57 = vmul.f32 256.0, %v421_v43 }
  0x2e   : > { %v583_v58 = vcvt.s32.f32 %v551_v35  ;;  %v558_v60 = vadd.s32 72, %v2307_v6  ;;  %v584_v62 = vcvt.s32.f32 %v552_v44  ;;  %v2397_v0 = vmax.f32 %v454_v47, 0.0 }
  0x2f   : > { %v561_v4 = vadd.s32 96, %v2307_v6  ;;  %v485_v9 = vfloor.f32 %v2390_v57  ;;  %v562_v12 = vadd.s32 104, %v2307_v6  ;;  %v587_v13 = vcvt.s32.f32 %v555_v49 }
  0x30   : > { %v588_v14 = vcvt.s32.f32 %v556_v52  ;;  %v563_v15 = vadd.s32 112, %v2307_v6  ;;  %v589_v16 = vcvt.s32.f32 %v557_v53  ;;  %v590_v17 = vcvt.s32.f32 %v558_v60 }
  0x31   : > { %988 = vperm.xlu1 %2138, %v533_v45   ;;  %983 = vperm.xlu0 %2137, %v532_v46   ;;  %v553_v45 = vadd.s32 32, %v2307_v6  ;;  %v455_v46 = vfloor.f32 %v423_v30  ;;  %v564_v22 = vadd.s32 120, %v2307_v6  ;;  %v614_v24 = vmul.f32 0.003921569, %v582_v54 }
  0x32   : > { %v615_v25 = vmul.f32 0.003921569, %v583_v58  ;;  %v565_v26 = vadd.s32 128, %v2307_v6  ;;  %v593_v28 = vcvt.s32.f32 %v561_v4  ;;  %v616_v30 = vmul.f32 0.003921569, %v584_v62 }
  0x33   : > { %v2395_v63 = vmax.f32 %v455_v46, 0.0  ;;  %v585_v5 = vcvt.s32.f32 %v553_v45  ;;  %v2410_v32 = vadd.s32 136, %v2307_v6  ;;  %v594_v34 = vcvt.s32.f32 %v562_v12 }
  0x34   : > { %v2413_v43 = vadd.s32 144, %v2307_v6  ;;  %v595_v44 = vcvt.s32.f32 %v563_v15  ;;  %v619_v45 = vmul.f32 0.003921569, %v587_v13  ;;  %v596_v46 = vcvt.s32.f32 %v564_v22 }
  0x35   : > { %973 = vperm.xlu1 %2138, %v530_v51   ;;  %978 = vperm.xlu0 %2137, %v531_v55   ;;  %v420_v51 = vld [vmem:[%s2304_s29 + $0xf0] sm:$0xff]  ;;  %v522_v55 = vmin.f32 %v2371_v37, 255.0  ;;  %v617_v35 = vmul.f32 0.003921569, %v585_v5  ;;  %v2416_v47 = vmul.f32 0.003921569, %v588_v14  ;;  %vm647_vm5 = vcmp.lt.f32.partialorder %v614_v24, %v2322_v21 }
  0x36   : > { %v597_v49 = vcvt.s32.f32 %v565_v26  ;;  %vm648_vm6 = vcmp.lt.f32.partialorder %v614_v24, %v2329_v29  ;;  %v2427_v53 = vadd.s32 152, %v2307_v6  ;;  %v598_v54 = vcvt.s32.f32 %v2410_v32 }
  0x37   : > { %vm649_vm7 = vcmp.lt.f32.partialorder %v615_v25, %v2322_v21  ;;  %v599_v60 = vcvt.s32.f32 %v2413_v43  ;;  %vm650_vm8 = vcmp.lt.f32.partialorder %v615_v25, %v2329_v29  ;;  %v1872_v62 = vsel %vm647_vm5, 1.0, %v2213_v11 }
  0x38   : > { %vm651_vm9 = vcmp.lt.f32.partialorder %v616_v30, %v2322_v21  ;;  %v1873_v5 = vsel %vm648_vm6, 1.0, %v2213_v11  ;;  %v2449_v12 = vmul.f32 0.003921569, %v594_v34  ;;  %vm652_vm10 = vcmp.lt.f32.partialorder %v616_v30, %v2329_v29 }
  0x39   : > { %963 = vperm.xlu1 %2138, %v528_v59   ;;  %968 = vperm.xlu0 %2137, %v529_v61   ;;  %v520_v59 = vmin.f32 %v2377_v42, 255.0  ;;  %v559_v61 = vadd.s32 80, %v2307_v6  ;;  %v1874_v13 = vsel %vm649_vm7, 1.0, %v2213_v11  ;;  %v600_v14 = vcvt.s32.f32 %v2427_v53 }
  0x3a   : > { %vm653_vm11 = vcmp.lt.f32.partialorder %v617_v35, %v2322_v21  ;;  %v1875_v15 = vsel %vm650_vm8, 1.0, %v2213_v11  ;;  %vm654_vm12 = vcmp.lt.f32.partialorder %v617_v35, %v2329_v29  ;;  %v570_v22 = vadd.s32 168, %v2307_v6 }
  0x3b   : > { %v591_v20 = vcvt.s32.f32 %v559_v61  ;;  %v1878_v26 = vsel %vm653_vm11, 1.0, %v2213_v11  ;;  %v2466_v30 = vmul.f32 0.003921569, %v596_v46  ;;  %vm657_vm15 = vcmp.lt.f32.partialorder %v619_v45, %v2322_v21 }
  0x3c   : > { %v1879_v32 = vsel %vm654_vm12, 1.0, %v2213_v11  ;;  %v2470_v35 = vmul.f32 0.003921569, %v597_v49  ;;  %vm658_vm0 = vcmp.lt.f32.partialorder %v619_v45, %v2329_v29  ;;  %v571_v53 = vadd.s32 176, %v2307_v6 }
  0x3d   : > { %953 = vperm.xlu1 %2138, %v526_v1   ;;  %958 = vperm.xlu0 %2137, %v527_v3   ;;  %v2399_v1 = vmul.f32 256.0, %v420_v51  ;;  %v560_v3 = vadd.s32 88, %v2307_v6  ;;  %v2421_v51 = vmul.f32 0.003921569, %v590_v17  ;;  %v2423_v52 = vmul.f32 0.003921569, %v591_v20 }
  0x3e   : > { %v1876_v17 = vsel %vm651_vm9, 1.0, %v2213_v11  ;;  %vm659_vm1 = vcmp.lt.f32.partialorder %v2416_v47, %v2322_v21  ;;  %vm660_vm2 = vcmp.lt.f32.partialorder %v2416_v47, %v2329_v29  ;;  %v1882_v49 = vsel %vm657_vm15, 1.0, %v2213_v11 }
  0x3f   : > { %v592_v23 = vcvt.s32.f32 %v560_v3  ;;  %v2439_v3 = vmul.f32 0.003921569, %v593_v28  ;;  %v1883_v45 = vsel %vm658_vm0, 1.0, %v2213_v11  ;;  %v603_v47 = vcvt.s32.f32 %v571_v53 }
  0x40   : > { %vm663_vm5 = vcmp.lt.f32.partialorder %v2421_v51, %v2322_v21  ;;  %vm664_vm6 = vcmp.lt.f32.partialorder %v2421_v51, %v2329_v29  ;;  %vm665_vm7 = vcmp.lt.f32.partialorder %v2423_v52, %v2322_v21  ;;  %vm666_vm8 = vcmp.lt.f32.partialorder %v2423_v52, %v2329_v29 }
  0x41   : > { %943 = vperm.xlu1 %2138, %v524_v7   ;;  %948 = vperm.xlu0 %2137, %v525_v8   ;;  %v586_v7 = vcvt.s32.f32 %v554_v48  ;;  %v613_v8 = vmul.f32 0.003921569, %v581_v40  ;;  %v2418_v48 = vmul.f32 0.003921569, %v589_v16  ;;  %v2430_v58 = vmul.f32 0.003921569, %v592_v23 }
  0x42   : > { %v1877_v23 = vsel %vm652_vm10, 1.0, %v2213_v11  ;;  %vm669_vm11 = vcmp.lt.f32.partialorder %v2439_v3, %v2322_v21  ;;  %v1891_v52 = vsel %vm666_vm8, 1.0, %v2213_v11  ;;  %vm670_vm12 = vcmp.lt.f32.partialorder %v2439_v3, %v2329_v29 }
  0x43   : > { %vm645_vm3 = vcmp.lt.f32.partialorder %v613_v8, %v2322_v21  ;;  %v618_v40 = vmul.f32 0.003921569, %v586_v7  ;;  %vm646_vm4 = vcmp.lt.f32.partialorder %v613_v8, %v2329_v29  ;;  %v2447_v7 = vadd.s32 160, %v2307_v6 }
  0x44   : > { %v1870_v61 = vsel %vm645_vm3, 1.0, %v2213_v11  ;;  %v1871_v4 = vsel %vm646_vm4, 1.0, %v2213_v11  ;;  %v2456_v8 = vmul.f32 0.003921569, %v595_v44  ;;  %vm661_vm3 = vcmp.lt.f32.partialorder %v2418_v48, %v2322_v21 }
  0x45   : > { %v837_v16 = vadd.f32 %v1872_v62, %v1870_v61  ;;  %v874_v20 = vadd.f32 %v1873_v5, %v1871_v4  ;;  %vm655_vm13 = vcmp.lt.f32.partialorder %v618_v40, %v2322_v21  ;;  %v601_v25 = vcvt.s32.f32 %v2447_v7 }
  0x46   : > { %vm656_vm14 = vcmp.lt.f32.partialorder %v618_v40, %v2329_v29  ;;  %v1880_v43 = vsel %vm655_vm13, 1.0, %v2213_v11  ;;  %v602_v61 = vcvt.s32.f32 %v570_v22  ;;  %v2481_v4 = vmul.f32 0.003921569, %v598_v54 }
  0x47   : > { %v838_v24 = vadd.f32 %v1874_v13, %v837_v16  ;;  %v875_v28 = vadd.f32 %v1875_v15, %v874_v20  ;;  %v1881_v40 = vsel %vm656_vm14, 1.0, %v2213_v11  ;;  %v572_v7 = vadd.s32 184, %v2307_v6 }
  0x48   : > { %vm662_vm4 = vcmp.lt.f32.partialorder %v2418_v48, %v2329_v29  ;;  %v1884_v13 = vsel %vm659_vm1, 1.0, %v2213_v11  ;;  %v1885_v54 = vsel %vm660_vm2, 1.0, %v2213_v11  ;;  %v1886_v20 = vsel %vm661_vm3, 1.0, %v2213_v11 }
  0x49   : > { %v839_v34 = vadd.f32 %v1876_v17, %v838_v24  ;;  %v876_v44 = vadd.f32 %v1877_v23, %v875_v28  ;;  %v2493_v17 = vmul.f32 0.003921569, %v599_v60  ;;  %v2498_v23 = vmul.f32 0.003921569, %v600_v14 }
  0x4a   : > { %v1887_v48 = vsel %vm662_vm4, 1.0, %v2213_v11  ;;  %v1888_v60 = vsel %vm663_vm5, 1.0, %v2213_v11  ;;  %v604_v51 = vcvt.s32.f32 %v572_v7  ;;  %vm667_vm9 = vcmp.lt.f32.partialorder %v2430_v58, %v2322_v21 }
  0x4b   : > { %v840_v46 = vadd.f32 %v1878_v26, %v839_v34  ;;  %v877_v62 = vadd.f32 %v1879_v32, %v876_v44  ;;  %v573_v26 = vadd.s32 192, %v2307_v6  ;;  %v1889_v14 = vsel %vm664_vm6, 1.0, %v2213_v11 }
  0x4c   : > { %v2510_v34 = vmul.f32 0.003921569, %v601_v25  ;;  %vm668_vm10 = vcmp.lt.f32.partialorder %v2430_v58, %v2329_v29  ;;  %v2515_v53 = vmul.f32 0.003921569, %v602_v61  ;;  %v1892_v25 = vsel %vm667_vm9, 1.0, %v2213_v11 }
  0x4d   : > { %v841_v5 = vadd.f32 %v1880_v43, %v840_v46  ;;  %v878_v15 = vadd.f32 %v1881_v40, %v877_v62  ;;  %v1890_v43 = vsel %vm665_vm7, 1.0, %v2213_v11  ;;  %v574_v46 = vadd.s32 200, %v2307_v6 }
  0x4e   : > { %v2524_v58 = vmul.f32 0.003921569, %v603_v47  ;;  %vm671_vm13 = vcmp.lt.f32.partialorder %v2449_v12, %v2322_v21  ;;  %v1893_v61 = vsel %vm668_vm10, 1.0, %v2213_v11  ;;  %vm672_vm14 = vcmp.lt.f32.partialorder %v2449_v12, %v2329_v29 }
  0x4f   : > { %v842_v16 = vadd.f32 %v1882_v49, %v841_v5  ;;  %v879_v22 = vadd.f32 %v1883_v45, %v878_v15  ;;  %v605_v45 = vcvt.s32.f32 %v573_v26  ;;  %v1894_v5 = vsel %vm669_vm11, 1.0, %v2213_v11 }
  0x50   : > { %vm673_vm15 = vcmp.lt.f32.partialorder %v2456_v8, %v2322_v21  ;;  %v1895_v3 = vsel %vm670_vm12, 1.0, %v2213_v11  ;;  %v2538_v47 = vadd.s32 208, %v2307_v6  ;;  %vm674_vm0 = vcmp.lt.f32.partialorder %v2456_v8, %v2329_v29 }
  0x51   : > { %v843_v24 = vadd.f32 %v1884_v13, %v842_v16  ;;  %v880_v28 = vadd.f32 %v1885_v54, %v879_v22  ;;  %v2532_v13 = vmul.f32 0.003921569, %v604_v51  ;;  %v1896_v54 = vsel %vm671_vm13, 1.0, %v2213_v11 }
  0x52   : > { %v606_v16 = vcvt.s32.f32 %v574_v46  ;;  %vm675_vm1 = vcmp.lt.f32.partialorder %v2466_v30, %v2322_v21  ;;  %vm676_vm2 = vcmp.lt.f32.partialorder %v2466_v30, %v2329_v29  ;;  %v576_v8 = vadd.s32 216, %v2307_v6 }
  0x53   : > { %v844_v32 = vadd.f32 %v1886_v20, %v843_v24  ;;  %v881_v44 = vadd.f32 %v1887_v48, %v880_v28  ;;  %v1897_v20 = vsel %vm672_vm14, 1.0, %v2213_v11  ;;  %v2546_v48 = vmul.f32 0.003921569, %v605_v45 }
  0x54   : > { %v1898_v24 = vsel %vm673_vm15, 1.0, %v2213_v11  ;;  %vm677_vm3 = vcmp.lt.f32.partialorder %v2470_v35, %v2322_v21  ;;  %v577_v51 = vadd.s32 224, %v2307_v6  ;;  %vm678_vm4 = vcmp.lt.f32.partialorder %v2470_v35, %v2329_v29 }
  0x55   : > { %v845_v40 = vadd.f32 %v1888_v60, %v844_v32  ;;  %v882_v49 = vadd.f32 %v1889_v14, %v881_v44  ;;  %v1899_v60 = vsel %vm674_vm0, 1.0, %v2213_v11  ;;  %v1900_v14 = vsel %vm675_vm1, 1.0, %v2213_v11 }
  0x56   : > { %v578_v30 = vadd.s32 232, %v2307_v6  ;;  %vm679_vm5 = vcmp.lt.f32.partialorder %v2481_v4, %v2322_v21  ;;  %vm680_vm6 = vcmp.lt.f32.partialorder %v2481_v4, %v2329_v29  ;;  %v2570_v46 = vadd.s32 248, %v2307_v6 }
  0x57   : > { %v846_v62 = vadd.f32 %v1890_v43, %v845_v40  ;;  %v883_v7 = vadd.f32 %v1891_v52, %v882_v49  ;;  %v1901_v43 = vsel %vm676_vm2, 1.0, %v2213_v11  ;;  %v2564_v52 = vadd.s32 240, %v2307_v6 }
  0x58   : > { %v1902_v40 = vsel %vm677_vm3, 1.0, %v2213_v11  ;;  %vm681_vm7 = vcmp.lt.f32.partialorder %v2493_v17, %v2322_v21  ;;  %vm682_vm8 = vcmp.lt.f32.partialorder %v2493_v17, %v2329_v29  ;;  %v2579_v45 = vmul.f32 0.003921569, %v606_v16 }
  0x59   : > { %v847_v15 = vadd.f32 %v1892_v25, %v846_v62  ;;  %v884_v12 = vadd.f32 %v1893_v61, %v883_v7  ;;  %v1903_v25 = vsel %vm678_vm4, 1.0, %v2213_v11  ;;  %v607_v61 = vcvt.s32.f32 %v2538_v47 }
  0x5a   : > { %v1904_v62 = vsel %vm679_vm5, 1.0, %v2213_v11  ;;  %vm683_vm9 = vcmp.lt.f32.partialorder %v2498_v23, %v2322_v21  ;;  %vm684_vm10 = vcmp.lt.f32.partialorder %v2498_v23, %v2329_v29  ;;  %vm215_vm11 = vcmp.lt.s32.totalorder %v2359_v19, 1 }
  0x5b   : > { %v848_v22 = vadd.f32 %v1894_v5, %v847_v15  ;;  %v885_v26 = vadd.f32 %v1895_v3, %v884_v12  ;;  %v1905_v5 = vsel %vm680_vm6, 1.0, %v2213_v11  ;;  %v608_v3 = vcvt.s32.f32 %v576_v8 }
  0x5c   : > { %v1906_v15 = vsel %vm681_vm7, 1.0, %v2213_v11  ;;  %vm208_vm12 = vcmp.lt.s32.totalorder %v2359_v19, 127  ;;  %v609_v17 = vcvt.s32.f32 %v577_v51  ;;  %vm685_vm13 = vcmp.lt.f32.partialorder %v2510_v34, %v2322_v21 }
  0x5d   : > { %v849_v28 = vadd.f32 %v1896_v54, %v848_v22  ;;  %v886_v32 = vadd.f32 %v1897_v20, %v885_v26  ;;  %v1907_v54 = vsel %vm682_vm8, 1.0, %v2213_v11  ;;  %vm2594_vm14 = vcmp.eq.s32.totalorder %v202_v36, 0 }
  0x5e   : > { %vm2600_vm15 = vcmp.eq.s32.totalorder %v203_v41, 0  ;;  %v610_v22 = vcvt.s32.f32 %v578_v30  ;;  %vm686_vm0 = vcmp.lt.f32.partialorder %v2510_v34, %v2329_v29  ;;  %v611_v36 = vcvt.s32.f32 %v2564_v52 }
  0x5f   : > { %v850_v44 = vadd.f32 %v1898_v24, %v849_v28  ;;  %v887_v35 = vadd.f32 %v1899_v60, %v886_v32  ;;  %v1908_v24 = vsel %vm683_vm9, 1.0, %v2213_v11  ;;  %vm687_vm1 = vcmp.lt.f32.partialorder %v2515_v53, %v2322_v21 }
  0x60   : > { %v1909_v41 = vsel %vm684_vm10, 1.0, %v2213_v11  ;;  %v612_v60 = vcvt.s32.f32 %v2570_v46  ;;  %vm688_vm2 = vcmp.lt.f32.partialorder %v2515_v53, %v2329_v29  ;;  %v1910_v34 = vsel %vm685_vm13, 1.0, %v2213_v11 }
  0x61   : > { %v851_v49 = vadd.f32 %v1900_v14, %v850_v44  ;;  %v888_v4 = vadd.f32 %v1901_v43, %v887_v35  ;;  %v639_v51 = vmul.f32 0.003921569, %v607_v61  ;;  %vm689_vm3 = vcmp.lt.f32.partialorder %v2524_v58, %v2322_v21 }
  0x62   : > { %v1911_v14 = vsel %vm686_vm0, 1.0, %v2213_v11  ;;  %v2624_v30 = vmul.f32 0.003921569, %v608_v3  ;;  %v2626_v23 = vmul.f32 0.003921569, %v609_v17  ;;  %v1912_v43 = vsel %vm687_vm1, 1.0, %v2213_v11 }
  0x63   : > { %v852_v7 = vadd.f32 %v1902_v40, %v851_v49  ;;  %v889_v47 = vadd.f32 %v1903_v25, %v888_v4  ;;  %vm690_vm4 = vcmp.lt.f32.partialorder %v2524_v58, %v2329_v29  ;;  %vm691_vm5 = vcmp.lt.f32.partialorder %v2532_v13, %v2322_v21 }
  0x64   : > { %v1913_v53 = vsel %vm688_vm2, 1.0, %v2213_v11  ;;  %vm692_vm6 = vcmp.lt.f32.partialorder %v2532_v13, %v2329_v29  ;;  %vm693_vm7 = vcmp.lt.f32.partialorder %v2546_v48, %v2322_v21  ;;  %v1914_v25 = vsel %vm689_vm3, 1.0, %v2213_v11 }
  0x65   : > { %v853_v12 = vadd.f32 %v1904_v62, %v852_v7  ;;  %v890_v26 = vadd.f32 %v1905_v5, %v889_v47  ;;  %v2639_v61 = vmul.f32 0.003921569, %v610_v22  ;;  %vm694_vm8 = vcmp.lt.f32.partialorder %v2546_v48, %v2329_v29 }
  0x66   : > { %vm695_vm9 = vcmp.lt.f32.partialorder %v2579_v45, %v2322_v21  ;;  %vm696_vm10 = vcmp.lt.f32.partialorder %v2579_v45, %v2329_v29  ;;  %v1915_v13 = vsel %vm690_vm4, 1.0, %v2213_v11  ;;  %v1916_v62 = vsel %vm691_vm5, 1.0, %v2213_v11 }
  0x67   : > { %v854_v8 = vadd.f32 %v1906_v15, %v853_v12  ;;  %v891_v28 = vadd.f32 %v1907_v54, %v890_v26  ;;  %vm697_vm13 = vcmp.lt.f32.partialorder %v639_v51, %v2322_v21  ;;  %v1917_v3 = vsel %vm692_vm6, 1.0, %v2213_v11 }
  0x68   : > { %v1918_v15 = vsel %vm693_vm7, 1.0, %v2213_v11  ;;  %vm698_vm0 = vcmp.lt.f32.partialorder %v639_v51, %v2329_v29  ;;  %vm699_vm1 = vcmp.lt.f32.partialorder %v2624_v30, %v2322_v21  ;;  %v643_v48 = vmul.f32 0.003921569, %v611_v36 }
  0x69   : > { %v855_v32 = vadd.f32 %v1908_v24, %v854_v8  ;;  %v892_v44 = vadd.f32 %v1909_v41, %v891_v28  ;;  %vm700_vm2 = vcmp.lt.f32.partialorder %v2624_v30, %v2329_v29  ;;  %vm701_vm3 = vcmp.lt.f32.partialorder %v2626_v23, %v2322_v21 }
  0x6a   : > { %v2700_v36 = vmul.f32 0.003921569, %v612_v60  ;;  %v1923_v45 = vsel %vm698_vm0, 1.0, %v2213_v11  ;;  %vm702_vm4 = vcmp.lt.f32.partialorder %v2626_v23, %v2329_v29  ;;  %vm703_vm5 = vcmp.lt.f32.partialorder %v2639_v61, %v2322_v21 }
  0x6b   : > { %v856_v35 = vadd.f32 %v1910_v34, %v855_v32  ;;  %v893_v49 = vadd.f32 %v1911_v14, %v892_v44  ;;  %v1919_v14 = vsel %vm694_vm8, 1.0, %v2213_v11  ;;  %v1920_v32 = vsel %vm695_vm9, 1.0, %v2213_v11 }
  0x6c   : > { %v1921_v44 = vsel %vm696_vm10, 1.0, %v2213_v11  ;;  %v2721_v51 = vmax.f32 %v485_v9, 0.0  ;;  %vm704_vm6 = vcmp.lt.f32.partialorder %v2639_v61, %v2329_v29  ;;  %vm705_vm7 = vcmp.lt.f32.partialorder %v643_v48, %v2322_v21 }
  0x6d   : > { %v857_v58 = vadd.f32 %v1912_v43, %v856_v35  ;;  %v894_v4 = vadd.f32 %v1913_v53, %v893_v49  ;;  %v1924_v35 = vsel %vm699_vm1, 1.0, %v2213_v11  ;;  %v418_v49 = vld [vmem:[%s2304_s29 + $0xe0] sm:$0xff]  ;;  %v1927_v30 = vsel %vm702_vm4, 1.0, %v2213_v11 }
  0x6e   : > { %vm706_vm8 = vcmp.lt.f32.partialorder %v643_v48, %v2329_v29  ;;  %vm707_vm9 = vcmp.lt.f32.partialorder %v2700_v36, %v2322_v21  ;;  %v518_v23 = vmin.f32 %v2397_v0, 255.0  ;;  %v1930_v33 = vsel %vm705_vm7, 1.0, %v2213_v11  ;;  %v413_v0 = vld [vmem:[%s2304_s29 + $0xb8] sm:$0xff] }
  0x6f   : > { %v858_v47 = vadd.f32 %v1914_v25, %v857_v58  ;;  %v895_v8 = vadd.f32 %v1915_v13, %v894_v4  ;;  %v419_v25 = vld [vmem:[%s2304_s29 + $0xe8] sm:$0xff]  ;;  %v1925_v13 = vsel %vm700_vm2, 1.0, %v2213_v11  ;;  %vm708_vm10 = vcmp.lt.f32.partialorder %v2700_v36, %v2329_v29 }
  0x70   : > { %v451_v4 = vmul.f32 256.0, %v419_v25  ;;  %v445_v25 = vmul.f32 256.0, %v413_v0 }
  0x71   : > { %v859_v41 = vadd.f32 %v1916_v62, %v858_v47  ;;  %v896_v43 = vadd.f32 %v1917_v3, %v895_v8  ;;  %v1926_v62 = vsel %vm701_vm3, 1.0, %v2213_v11  ;;  %v549_v47 = vmin.f32 %v2721_v51, 255.0  ;;  %v411_v8 = vld [vmem:[%s2304_s29 + $0xa8] sm:$0xff] }
  0x73   : > { %v897_v53 = vadd.f32 %v1919_v14, %v896_v43  ;;  %v1931_v14 = vsel %vm706_vm8, 1.0, %v2213_v11 }
  0x75   : > { %v898_v60 = vadd.f32 %v1921_v44, %v897_v53  ;;  %v409_v44 = vld [vmem:[%s2304_s29 + $0x98] sm:$0xff] }
  0x77   : > { %v899_v9 = vadd.f32 %v1923_v45, %v898_v60 }
  0x9b   : > { %v212_v52 = vpop.permute.xlu1 %211  ;;  %v205_v40 = vpop.permute.xlu0 %204 }
  0x9f   : > { %v214_v5 = vpop.permute.xlu1 %213  ;;  %v207_v7 = vpop.permute.xlu0 %206 }
  0xa0   : > { %v216_v17 = vsel %vm215_vm11, %v212_v52, %v214_v5  ;;  %v217_v54 = vsel %vm215_vm11, %v214_v5, %v212_v52  ;;  %v209_v12 = vsel %vm208_vm12, %v205_v40, %v207_v7  ;;  %v210_v22 = vsel %vm208_vm12, %v207_v7, %v205_v40 }
  0xa1   : > { %v224_v24 = vsel %vm2594_vm14, %v209_v12, %v217_v54  ;;  %v225_v26 = vsel %vm2600_vm15, %v210_v22, %v216_v17  ;;  %v1922_v52 = vsel %vm697_vm13, 1.0, %v2213_v11  ;;  %v450_v5 = vmul.f32 256.0, %v418_v49  ;;  %v417_v17 = vld [vmem:[%s2304_s29 + $0xd8] sm:$0xff]  ;;  %v416_v54 = vld [vmem:[%s2304_s29 + $0xd0] sm:$0xff] }
  0xa2   : > { %v2665_v34 = vadd.f32 %v225_v26, %v2345_v39  ;;  %v2668_v28 = vadd.f32 %v224_v24, %v2335_v31  ;;  %v860_v39 = vadd.f32 %v1918_v15, %v859_v41  ;;  %v484_v31 = vfloor.f32 %v2399_v1  ;;  %v412_v41 = vld [vmem:[%s2304_s29 + $0xb0] sm:$0xff] }
  0xa3   : > { %v519_v1 = vmin.f32 %v2395_v63, 255.0  ;;  %v1928_v7 = vsel %vm703_vm5, 1.0, %v2213_v11  ;;  %v900_v15 = vadd.f32 %v1925_v13, %v899_v9  ;;  %v1929_v12 = vsel %vm704_vm6, 1.0, %v2213_v11 }
  0xa4   : > { %234 = vrot.lane.b32.xlu0 %v2665_v34, %s2216_s4  ;;  %232 = vrot.lane.b32.xlu1 %v2668_v28, %s2216_s4  ;;  %v861_v40 = vadd.f32 %v1920_v32, %v860_v39  ;;  %v2723_v58 = vmax.f32 %v484_v31, 0.0  ;;  %v483_v26 = vfloor.f32 %v451_v4  ;;  %v482_v61 = vfloor.f32 %v450_v5  ;;  %v410_v31 = vld [vmem:[%s2304_s29 + $0xa0] sm:$0xff] }
  0xa5   : > { %v901_v24 = vadd.f32 %v1927_v30, %v900_v15  ;;  %v1932_v32 = vsel %vm707_vm9, 1.0, %v2213_v11  ;;  %v449_v39 = vmul.f32 256.0, %v417_v17  ;;  %v448_v43 = vmul.f32 256.0, %v416_v54 }
  0xa6   : > { %v862_v46 = vadd.f32 %v1922_v52, %v861_v40  ;;  %v548_v37 = vmin.f32 %v2723_v58, 255.0  ;;  %v408_v52 = vld [vmem:[%s2304_s29 + $0x90] sm:$0xff]  ;;  %v1933_v49 = vsel %vm708_vm10, 1.0, %v2213_v11  ;;  %v444_v60 = vmul.f32 256.0, %v412_v41 }
  0xa7   : > { %v902_v53 = vadd.f32 %v1929_v12, %v901_v24  ;;  %v443_v58 = vmul.f32 256.0, %v411_v8  ;;  %v442_v38 = vmul.f32 256.0, %v410_v31  ;;  %v440_v9 = vmul.f32 256.0, %v408_v52 }
  0xa8   : > { %241 = vrot.lane.b32.xlu0 %v2665_v34, %s2217_s5  ;;  %239 = vrot.lane.b32.xlu1 %v2668_v28, %s2217_s5  ;;  %v863_v57 = vadd.f32 %v1924_v35, %v862_v46  ;;  %v481_v42 = vfloor.f32 %v449_v39  ;;  %v514_v36 = vmax.f32 %v482_v61, 0.0  ;;  %v407_v39 = vld [vmem:[%s2304_s29 + $0x88] sm:$0xff] }
  0xa9   : > { %v475_v15 = vfloor.f32 %v443_v58  ;;  %v472_v0 = vfloor.f32 %v440_v9  ;;  %v439_v58 = vmul.f32 256.0, %v407_v39 }
  0xaa   : > { %v864_v3 = vadd.f32 %v1926_v62, %v863_v57  ;;  %v903_v62 = vadd.f32 %v1931_v14, %v902_v53  ;;  %v515_v57 = vmax.f32 %v483_v26, 0.0  ;;  %v513_v63 = vmax.f32 %v481_v42, 0.0 }
  0xab   : > { %v546_v26 = vmin.f32 %v514_v36, 255.0  ;;  %v2811_v51 = vmax.f32 %v472_v0, 0.0 }
  0xac   : > { %938 = vperm.xlu0 %2137, %v523_v50   ;;  %933 = vperm.xlu1 %2138, %v522_v55   ;;  %v415_v50 = vld [vmem:[%s2304_s29 + $0xc8] sm:$0xff]  ;;  %v414_v55 = vld [vmem:[%s2304_s29 + $0xc0] sm:$0xff]  ;;  %v865_v22 = vadd.f32 %v1928_v7, %v864_v3  ;;  %v2780_v45 = vpop.permute.xlu1 %988  ;;  %v2790_v46 = vpop.permute.xlu0 %983  ;;  %v904_v5 = vadd.f32 %v1933_v49, %v903_v62  ;;  %v477_v7 = vfloor.f32 %v445_v25  ;;  %v476_v3 = vfloor.f32 %v444_v60 }
  0xad   : > { %v447_v48 = vmul.f32 256.0, %v415_v50  ;;  %v446_v35 = vmul.f32 256.0, %v414_v55  ;;  %v474_v50 = vfloor.f32 %v442_v38 }
  0xae   : > { %v866_v40 = vadd.f32 %v1930_v33, %v865_v22  ;;  %v905_v54 = vrot.slane %v904_v5, 4  ;;  %v547_v33 = vmin.f32 %v515_v57, 255.0  ;;  %v2800_v8 = vmax.f32 %v477_v7, 0.0 }
  0xaf   : > { %v479_v11 = vfloor.f32 %v447_v48  ;;  %v478_v30 = vfloor.f32 %v446_v35  ;;  %v2802_v14 = vmax.f32 %v476_v3, 0.0  ;;  %v471_v7 = vfloor.f32 %v439_v58 }
  0xb0   : > { %928 = vperm.xlu0 %2137, %v521_v56   ;;  %923 = vperm.xlu1 %2138, %v520_v59   ;;  %v867_v13 = vadd.f32 %v1932_v32, %v866_v40  ;;  %v441_v56 = vmul.f32 256.0, %v409_v44  ;;  %v480_v59 = vfloor.f32 %v448_v43  ;;  %v2794_v12 = vpop.permute.xlu1 %973  ;;  %v2796_v22 = vpop.permute.xlu0 %978  ;;  %v906_v24 = vadd.f32 %v905_v54, %v904_v5  ;;  %v406_v40 = vld [vmem:[%s2304_s29 + $0x80] sm:$0xff]  ;;  %s147_s29 = sand.u32 1, %s2202_s10  }
  0xb1   : > { %v511_v61 = vmax.f32 %v479_v11, 0.0  ;;  %v510_v41 = vmax.f32 %v478_v30, 0.0  ;;  %v2804_v32 = vmax.f32 %v475_v15, 0.0  ;;  %v2807_v44 = vmax.f32 %v474_v50, 0.0 }
  0xb2   : > { %v868_v4 = vrot.slane %v867_v13, 4  ;;  %v473_v55 = vfloor.f32 %v441_v56  ;;  %v907_v31 = vrot.slane %v906_v24, 2  ;;  %v541_v60 = vmin.f32 %v2800_v8, 255.0 }
  0xb3   : > { %v543_v25 = vmin.f32 %v511_v61, 255.0  ;;  %v542_v49 = vmin.f32 %v510_v41, 255.0  ;;  %v540_v62 = vmin.f32 %v2802_v14, 255.0  ;;  %v539_v57 = vmin.f32 %v2804_v32, 255.0 }
  0xb4   : > { %918 = vperm.xlu0 %2137, %v519_v1   ;;  %913 = vperm.xlu1 %2138, %v518_v23   ;;  %v869_v17 = vadd.f32 %v868_v4, %v867_v13  ;;  %v512_v1 = vmax.f32 %v480_v59, 0.0  ;;  %v2809_v52 = vmax.f32 %v473_v55, 0.0  ;;  %v908_v48 = vadd.f32 %v907_v31, %v906_v24  ;;  %v964_v35 = vpop.permute.xlu1 %963  ;;  %v2815_v13 = vpop.permute.xlu0 %968 }
  0xb5   : > { %v538_v9 = vmin.f32 %v2807_v44, 255.0  ;;  %v536_v59 = vmin.f32 %v2811_v51, 255.0  ;;  %v2824_v4 = vmul.f32 256.0, %v406_v40  ;;  %v503_v40 = vmax.f32 %v471_v7, 0.0 }
  0xb6   : > { %v870_v23 = vrot.slane %v869_v17, 2  ;;  %v909_v56 = vrot.slane %v908_v48, 1  ;;  %v537_v42 = vmin.f32 %v2809_v52, 255.0  ;;  %v228_v52 = vshra.s32 %v2359_v19, 1 }
  0xb7   : > { %v229_v51 = vshra.s32 %v2364_v27, 1 }
  0xb8   : > { %1068 = vperm.xlu0 %2137, %v549_v47   ;;  %1063 = vperm.xlu1 %2138, %v548_v37   ;;  %v871_v43 = vadd.f32 %v870_v23, %v869_v17  ;;  %v545_v47 = vmin.f32 %v513_v63, 255.0  ;;  %v544_v37 = vmin.f32 %v512_v1, 255.0  ;;  %v2826_v5 = vadd.f32 %v909_v56, %v908_v48  ;;  %v954_v55 = vpop.permute.xlu1 %953  ;;  %v959_v24 = vpop.permute.xlu0 %958 }
  0xba   : > { %v872_v53 = vrot.slane %v871_v43, 1  ;;  %v1102_v17 = vsub.f32 %v2780_v45, %v2826_v5  ;;  %v1096_v63 = vsub.f32 %v2794_v12, %v2826_v5  ;;  %v1098_v23 = vsub.f32 %v2796_v22, %v2826_v5 }
  0xbb   : > { %v1092_v41 = vsub.f32 %v964_v35, %v2826_v5 }
  0xbc   : > { %1058 = vperm.xlu0 %2137, %v547_v33   ;;  %1053 = vperm.xlu1 %2138, %v546_v26   ;;  %v2819_v38 = vadd.f32 %v872_v53, %v871_v43  ;;  %v1100_v33 = vsub.f32 %v2790_v46, %v2826_v5  ;;  %v1160_v8 = vand.u32 2147483647, %v1096_v63  ;;  %v1162_v14 = vand.u32 2147483647, %v1098_v23 }
  0xbd   : > { %v1094_v43 = vsub.f32 %v2815_v13, %v2826_v5  ;;  %v1088_v53 = vsub.f32 %v954_v55, %v2826_v5 }
  0xbe   : > { %v1101_v36 = vsub.f32 %v2780_v45, %v2819_v38  ;;  %v1099_v11 = vsub.f32 %v2790_v46, %v2819_v38  ;;  %v1095_v30 = vsub.f32 %v2794_v12, %v2819_v38  ;;  %v1097_v3 = vsub.f32 %v2796_v22, %v2819_v38 }
  0xbf   : > { %v1091_v15 = vsub.f32 %v964_v35, %v2819_v38  ;;  %v1093_v50 = vsub.f32 %v2815_v13, %v2819_v38  ;;  %v1164_v61 = vand.u32 2147483647, %v1100_v33  ;;  %v1166_v45 = vand.u32 2147483647, %v1102_v17 }
  0xc0   : > { %1048 = vperm.xlu0 %2137, %v545_v47   ;;  %1043 = vperm.xlu1 %2138, %v544_v37   ;;  %v1165_v54 = vand.u32 2147483647, %v1101_v36  ;;  %v1163_v0 = vand.u32 2147483647, %v1099_v11  ;;  %v1159_v1 = vand.u32 2147483647, %v1095_v30  ;;  %v470_v46 = vfloor.f32 %v2824_v4  ;;  %v944_v37 = vpop.permute.xlu1 %943 }
  0xc1   : > { %v1161_v26 = vand.u32 2147483647, %v1097_v3  ;;  %v1155_v39 = vand.u32 2147483647, %v1091_v15  ;;  %vm1228_vm0 = vcmp.le.f32.partialorder %v1164_v61, 1.0  ;;  %vm1230_vm1 = vcmp.le.f32.partialorder %v1166_v45, 1.0 }
  0xc2   : > { %vm1223_vm13 = vcmp.le.f32.partialorder %v1159_v1, 1.0  ;;  %v1156_v12 = vand.u32 2147483647, %v1092_v41  ;;  %vm1224_vm2 = vcmp.le.f32.partialorder %v1160_v8, 1.0  ;;  %vm1226_vm3 = vcmp.le.f32.partialorder %v1162_v14, 1.0  ;;  %vm2000_vm4 = vmpackc.low %vm1230_vm1, %vm1228_vm0 }
  0xc3   : > { %vm1227_vm5 = vcmp.le.f32.partialorder %v1163_v0, 1.0  ;;  %vm1229_vm6 = vcmp.le.f32.partialorder %v1165_v54, 1.0  ;;  %vm1225_vm7 = vcmp.le.f32.partialorder %v1161_v26, 1.0  ;;  %v2218_v22 = vmov 1.0|1.0   ;;  %vm2004_vm9 = vmpackc.low %vm1226_vm3, %vm1224_vm2 }
  0xc4   : > { %1038 = vperm.xlu0 %2137, %v543_v25   ;;  %1033 = vperm.xlu1 %2138, %v542_v49   ;;  %vm2002_vm8 = vmpackc.low %vm1229_vm6, %vm1227_vm5  ;;  %v1157_v31 = vand.u32 2147483647, %v1093_v50  ;;  %v1087_v47 = vsub.f32 %v954_v55, %v2819_v38  ;;  %v1089_v48 = vsub.f32 %v959_v24, %v2819_v38  ;;  %v1090_v35 = vsub.f32 %v959_v24, %v2826_v5  ;;  %v949_v25 = vpop.permute.xlu0 %948 }
  0xc5   : > { %2001 = vmatprep.subr.msk.bf16.mxu0 %vm2000_vm4, %v2218_v22  ;;  %vm1219_vm10 = vcmp.le.f32.partialorder %v1155_v39, 1.0  ;;  %vm1220_vm0 = vcmp.le.f32.partialorder %v1156_v12, 1.0  ;;  %v1158_v49 = vand.u32 2147483647, %v1094_v43  ;;  %vm2006_vm4 = vmpackc.low %vm1225_vm7, %vm1223_vm13  ;;  %v1083_v13 = vsub.f32 %v944_v37, %v2819_v38 }
  0xc6   : > { %2003 = vmatpush1.bf16.msk.msra.mxu0 %vm2002_vm8, %v2218_v22  ;;  %vm1221_vm1 = vcmp.le.f32.partialorder %v1157_v31, 1.0  ;;  %v1154_v58 = vand.u32 2147483647, %v1090_v35  ;;  %v1151_v56 = vand.u32 2147483647, %v1087_v47  ;;  %v1085_v36 = vsub.f32 %v949_v25, %v2819_v38 }
  0xc7   : > { %2005 = vmatprep.subr.msk.bf16.mxu0 %vm2004_vm9, %v2218_v22  ;;  %vm1222_vm2 = vcmp.le.f32.partialorder %v1158_v49, 1.0  ;;  %v1153_v4 = vand.u32 2147483647, %v1089_v48  ;;  %v502_v11 = vmax.f32 %v470_v46, 0.0  ;;  %v1086_v7 = vsub.f32 %v949_v25, %v2826_v5  ;;  %vm2010_vm6 = vmpackc.low %vm1221_vm1, %vm1219_vm10 }
  0xc8   : > { %1028 = vperm.xlu0 %2137, %v541_v60   ;;  %1023 = vperm.xlu1 %2138, %v540_v62   ;;  %v1152_v60 = vand.u32 2147483647, %v1088_v53  ;;  %v1084_v62 = vsub.f32 %v944_v37, %v2826_v5  ;;  %vm1218_vm5 = vcmp.le.f32.partialorder %v1154_v58, 1.0  ;;  %vm2008_vm13 = vmpackc.low %vm1222_vm2, %vm1220_vm0  ;;  %v1147_v3 = vand.u32 2147483647, %v1083_v13 }
  0xc9   : > { %vm1215_vm7 = vcmp.le.f32.partialorder %v1151_v56, 1.0  ;;  %vm1217_vm8 = vcmp.le.f32.partialorder %v1153_v4, 1.0  ;;  %v1149_v32 = vand.u32 2147483647, %v1085_v36  ;;  %v1150_v44 = vand.u32 2147483647, %v1086_v7 }
  0xca   : > { %vm1216_vm3 = vcmp.le.f32.partialorder %v1152_v60, 1.0  ;;  %v1148_v30 = vand.u32 2147483647, %v1084_v62  ;;  %2007 = vmatpush1.bf16.msk.msra.mxu0 %vm2006_vm4, %v2218_v22  ;;  %vm2014_vm10 = vmpackc.low %vm1217_vm8, %vm1215_vm7  ;;  %vm1211_vm1 = vcmp.le.f32.partialorder %v1147_v3, 1.0 }
  0xcb   : > { %2009 = vmatprep.subr.msk.bf16.mxu0 %vm2008_vm13, %v2218_v22  ;;  %vm2012_vm9 = vmpackc.low %vm1218_vm5, %vm1216_vm3  ;;  %vm1214_vm4 = vcmp.le.f32.partialorder %v1150_v44, 1.0  ;;  %vm1213_vm2 = vcmp.le.f32.partialorder %v1149_v32, 1.0  ;;  %vm3309_vm5 = vcmp.lt.s32.totalorder %v2359_v19, 126 }
  0xcc   : > { %1018 = vperm.xlu0 %2137, %v539_v57   ;;  %1013 = vperm.xlu1 %2138, %v538_v9   ;;  %v535_v57 = vmin.f32 %v503_v40, 255.0  ;;  %v534_v9 = vmin.f32 %v502_v11, 255.0  ;;  %vm1212_vm0 = vcmp.le.f32.partialorder %v1148_v30, 1.0  ;;  %vm2018_vm3 = vmpackc.low %vm1213_vm2, %vm1211_vm1 }
  0xcd   : > { %vm2016_vm13 = vmpackc.low %vm1214_vm4, %vm1212_vm0 }
  0xce   : > { %2011 = vmatpush1.bf16.msk.msra.mxu0 %vm2010_vm6, %v2218_v22  ;;  %vm3308_vm6 = vcmp.lt.s32.totalorder %v2359_v19, 2 }
  0xcf   : > { %2013 = vmatprep.subr.msk.bf16.mxu0 %vm2012_vm9, %v2218_v22 }
  0xd0   : > { %1008 = vperm.xlu0 %2137, %v537_v42   ;;  %1003 = vperm.xlu1 %2138, %v536_v59   ;;  %v2886_v42 = vand.u32 1, %v228_v52  ;;  %v2888_v59 = vand.u32 1, %v229_v51 }
  0xd2   : > { %2015 = vmatpush1.bf16.msk.msra.mxu0 %vm2014_vm10, %v2218_v22  ;;  %vm3307_vm7 = vcmp.eq.s32.totalorder %v2886_v42, 0  ;;  %vm3306_vm8 = vcmp.eq.s32.totalorder %v2888_v59, 0 }
  0xd3   : > { %2017 = vmatprep.subr.msk.bf16.mxu0 %vm2016_vm13, %v2218_v22 }
  0xd4   : > { %998 = vperm.xlu0 %2137, %v535_v57   ;;  %993 = vperm.xlu1 %2138, %v534_v9  }
  0xd6   : > { %2019 = vmatpush1.bf16.msk.msra.mxu0 %vm2018_vm3, %v2218_v22 }
 0x116   : > { %v233_v15 = vpop.permute.xlu1 %232  ;;  %v235_v17 = vpop.permute.xlu0 %234 }
 0x117   : > { %v237_v50 = vsel %vm3309_vm5, %v233_v15, %v235_v17  ;;  %v238_v55 = vsel %vm3309_vm5, %v235_v17, %v233_v15 }
 0x11a   : > { %v240_v54 = vpop.permute.xlu1 %239  ;;  %v242_v33 = vpop.permute.xlu0 %241 }
 0x11b   : > { %v244_v0 = vsel %vm3308_vm6, %v240_v54, %v242_v33  ;;  %v245_v63 = vsel %vm3308_vm6, %v242_v33, %v240_v54 }
 0x11c   : > { %v252_v1 = vsel %vm3307_vm7, %v237_v50, %v245_v63  ;;  %v253_v23 = vsel %vm3306_vm8, %v238_v55, %v244_v0 }
 0x11d   : > { %v2907_v24 = vadd.f32 %v252_v1, %v2668_v28  ;;  %v2910_v26 = vadd.f32 %v253_v23, %v2665_v34 }
 0x11f   : > { %260 = vrot.lane.b32.xlu1 %v2907_v24, %s2219_s6  ;;  %262 = vrot.lane.b32.xlu0 %v2910_v26, %s2219_s6 }
 0x123   : > { %267 = vrot.lane.b32.xlu1 %v2907_v24, %s2220_s7  ;;  %269 = vrot.lane.b32.xlu0 %v2910_v26, %s2220_s7 }
 0x127   : > { %v934_v61 = vpop.permute.xlu1 %933  ;;  %v939_v28 = vpop.permute.xlu0 %938 }
 0x128   : > { %v1079_v45 = vsub.f32 %v934_v61, %v2819_v38  ;;  %v1080_v34 = vsub.f32 %v934_v61, %v2826_v5  ;;  %v1081_v41 = vsub.f32 %v939_v28, %v2819_v38  ;;  %v1082_v46 = vsub.f32 %v939_v28, %v2826_v5 }
 0x12a   : > { %v1143_v8 = vand.u32 2147483647, %v1079_v45  ;;  %v1144_v14 = vand.u32 2147483647, %v1080_v34  ;;  %v1145_v39 = vand.u32 2147483647, %v1081_v41 }
 0x12b   : > { %v1146_v12 = vand.u32 2147483647, %v1082_v46  ;;  %v924_v43 = vpop.permute.xlu1 %923  ;;  %v929_v31 = vpop.permute.xlu0 %928 }
 0x12c   : > { %vm1207_vm9 = vcmp.le.f32.partialorder %v1143_v8, 1.0  ;;  %vm1208_vm0 = vcmp.le.f32.partialorder %v1144_v14, 1.0  ;;  %vm1209_vm4 = vcmp.le.f32.partialorder %v1145_v39, 1.0  ;;  %v1075_v47 = vsub.f32 %v924_v43, %v2819_v38 }
 0x12d   : > { %vm1210_vm10 = vcmp.le.f32.partialorder %v1146_v12, 1.0  ;;  %v1076_v37 = vsub.f32 %v924_v43, %v2826_v5  ;;  %v1077_v40 = vsub.f32 %v929_v31, %v2819_v38  ;;  %v1078_v53 = vsub.f32 %v929_v31, %v2826_v5  ;;  %vm2022_vm1 = vmpackc.low %vm1209_vm4, %vm1207_vm9 }
 0x12e   : > { %v1139_v48 = vand.u32 2147483647, %v1075_v47  ;;  %vm2020_vm2 = vmpackc.low %vm1210_vm10, %vm1208_vm0 }
 0x12f   : > { %v1140_v35 = vand.u32 2147483647, %v1076_v37  ;;  %v1141_v25 = vand.u32 2147483647, %v1077_v40  ;;  %v1142_v49 = vand.u32 2147483647, %v1078_v53  ;;  %2021 = vmatprep.subr.msk.bf16.mxu0 %vm2020_vm2, %v2218_v22  ;;  %v914_v60 = vpop.permute.xlu1 %913  ;;  %v919_v58 = vpop.permute.xlu0 %918 }
 0x130   : > { %vm1203_vm13 = vcmp.le.f32.partialorder %v1139_v48, 1.0  ;;  %v1071_v13 = vsub.f32 %v914_v60, %v2819_v38  ;;  %v1072_v62 = vsub.f32 %v914_v60, %v2826_v5  ;;  %2023 = vmatpush1.bf16.msk.msra.mxu0 %vm2022_vm1, %v2218_v22  ;;  %v1073_v56 = vsub.f32 %v919_v58, %v2819_v38 }
 0x131   : > { %vm1204_vm3 = vcmp.le.f32.partialorder %v1140_v35, 1.0  ;;  %vm1205_vm9 = vcmp.le.f32.partialorder %v1141_v25, 1.0  ;;  %vm1206_vm4 = vcmp.le.f32.partialorder %v1142_v49, 1.0  ;;  %v1074_v4 = vsub.f32 %v919_v58, %v2826_v5 }
 0x132   : > { %v1135_v36 = vand.u32 2147483647, %v1071_v13  ;;  %v1136_v11 = vand.u32 2147483647, %v1072_v62  ;;  %v1137_v30 = vand.u32 2147483647, %v1073_v56  ;;  %vm2024_vm0 = vmpackc.low %vm1206_vm4, %vm1204_vm3 }
 0x133   : > { %v1138_v7 = vand.u32 2147483647, %v1074_v4  ;;  %2025 = vmatprep.subr.msk.bf16.mxu0 %vm2024_vm0, %v2218_v22  ;;  %v1064_v3 = vpop.permute.xlu1 %1063  ;;  %vm2026_vm10 = vmpackc.low %vm1205_vm9, %vm1203_vm13  ;;  %v1069_v32 = vpop.permute.xlu0 %1068 }
 0x134   : > { %vm1199_vm2 = vcmp.le.f32.partialorder %v1135_v36, 1.0  ;;  %vm1200_vm1 = vcmp.le.f32.partialorder %v1136_v11, 1.0  ;;  %vm1201_vm8 = vcmp.le.f32.partialorder %v1137_v30, 1.0  ;;  %v1131_v44 = vsub.f32 %v1064_v3, %v2819_v38  ;;  %2027 = vmatpush1.bf16.msk.msra.mxu0 %vm2026_vm10, %v2218_v22 }
 0x135   : > { %vm1202_vm7 = vcmp.le.f32.partialorder %v1138_v7, 1.0  ;;  %v1132_v57 = vsub.f32 %v1064_v3, %v2826_v5  ;;  %v1133_v9 = vsub.f32 %v1069_v32, %v2819_v38  ;;  %v1134_v52 = vsub.f32 %v1069_v32, %v2826_v5  ;;  %vm2030_vm3 = vmpackc.low %vm1201_vm8, %vm1199_vm2 }
 0x136   : > { %v1195_v51 = vand.u32 2147483647, %v1131_v44  ;;  %vm2028_vm4 = vmpackc.low %vm1202_vm7, %vm1200_vm1 }
 0x137   : > { %v1196_v15 = vand.u32 2147483647, %v1132_v57  ;;  %v1197_v17 = vand.u32 2147483647, %v1133_v9  ;;  %v1198_v54 = vand.u32 2147483647, %v1134_v52  ;;  %2029 = vmatprep.subr.msk.bf16.mxu0 %vm2028_vm4, %v2218_v22  ;;  %v1054_v33 = vpop.permute.xlu1 %1053  ;;  %v1059_v50 = vpop.permute.xlu0 %1058 }
 0x138   : > { %vm1259_vm13 = vcmp.le.f32.partialorder %v1195_v51, 1.0  ;;  %v1127_v55 = vsub.f32 %v1054_v33, %v2819_v38  ;;  %v1128_v0 = vsub.f32 %v1054_v33, %v2826_v5  ;;  %2031 = vmatpush1.bf16.msk.msra.mxu0 %vm2030_vm3, %v2218_v22  ;;  %v1129_v63 = vsub.f32 %v1059_v50, %v2819_v38 }
 0x139   : > { %vm1260_vm9 = vcmp.le.f32.partialorder %v1196_v15, 1.0  ;;  %vm1261_vm8 = vcmp.le.f32.partialorder %v1197_v17, 1.0  ;;  %vm1262_vm0 = vcmp.le.f32.partialorder %v1198_v54, 1.0  ;;  %v1130_v1 = vsub.f32 %v1059_v50, %v2826_v5 }
 0x13a   : > { %v1191_v23 = vand.u32 2147483647, %v1127_v55  ;;  %v1192_v61 = vand.u32 2147483647, %v1128_v0  ;;  %v1193_v28 = vand.u32 2147483647, %v1129_v63  ;;  %vm2032_vm7 = vmpackc.low %vm1262_vm0, %vm1260_vm9 }
 0x13b   : > { %v1194_v45 = vand.u32 2147483647, %v1130_v1  ;;  %2033 = vmatprep.subr.msk.bf16.mxu0 %vm2032_vm7, %v2218_v22  ;;  %v1044_v34 = vpop.permute.xlu1 %1043  ;;  %vm2034_vm10 = vmpackc.low %vm1261_vm8, %vm1259_vm13  ;;  %v1049_v41 = vpop.permute.xlu0 %1048 }
 0x13c   : > { %vm1255_vm2 = vcmp.le.f32.partialorder %v1191_v23, 1.0  ;;  %vm1256_vm1 = vcmp.le.f32.partialorder %v1192_v61, 1.0  ;;  %vm1257_vm3 = vcmp.le.f32.partialorder %v1193_v28, 1.0  ;;  %v1123_v46 = vsub.f32 %v1044_v34, %v2819_v38  ;;  %2035 = vmatpush2.bf16.msk.msra.mxu0 %vm2034_vm10, %v2218_v22 }
 0x13d   : > { %vm1258_vm4 = vcmp.le.f32.partialorder %v1194_v45, 1.0  ;;  %v1124_v8 = vsub.f32 %v1044_v34, %v2826_v5  ;;  %v1125_v14 = vsub.f32 %v1049_v41, %v2819_v38  ;;  %v1126_v39 = vsub.f32 %v1049_v41, %v2826_v5  ;;  %vm2038_vm9 = vmpackc.low %vm1257_vm3, %vm1255_vm2 }
 0x13e   : > { %v1187_v12 = vand.u32 2147483647, %v1123_v46  ;;  %vm2036_vm0 = vmpackc.low %vm1258_vm4, %vm1256_vm1 }
 0x13f   : > { %v1188_v43 = vand.u32 2147483647, %v1124_v8  ;;  %v1189_v31 = vand.u32 2147483647, %v1125_v14  ;;  %v1190_v47 = vand.u32 2147483647, %v1126_v39  ;;  %2037 = vmatprep.subr.msk.bf16.mxu0 %vm2036_vm0, %v2218_v22  ;;  %v1034_v37 = vpop.permute.xlu1 %1033  ;;  %v1039_v40 = vpop.permute.xlu0 %1038 }
 0x140   : > { %vm1251_vm13 = vcmp.le.f32.partialorder %v1187_v12, 1.0  ;;  %v1119_v53 = vsub.f32 %v1034_v37, %v2819_v38  ;;  %v1120_v48 = vsub.f32 %v1034_v37, %v2826_v5  ;;  %2039 = vmatpush2.bf16.msk.msra.mxu0 %vm2038_vm9, %v2218_v22  ;;  %v1121_v35 = vsub.f32 %v1039_v40, %v2819_v38 }
 0x141   : > { %vm1252_vm8 = vcmp.le.f32.partialorder %v1188_v43, 1.0  ;;  %vm1253_vm7 = vcmp.le.f32.partialorder %v1189_v31, 1.0  ;;  %vm1254_vm10 = vcmp.le.f32.partialorder %v1190_v47, 1.0  ;;  %v1122_v25 = vsub.f32 %v1039_v40, %v2826_v5 }
 0x142   : > { %v1183_v49 = vand.u32 2147483647, %v1119_v53  ;;  %v1184_v60 = vand.u32 2147483647, %v1120_v48  ;;  %v1185_v58 = vand.u32 2147483647, %v1121_v35  ;;  %vm2040_vm2 = vmpackc.low %vm1254_vm10, %vm1252_vm8 }
 0x143   : > { %v1186_v13 = vand.u32 2147483647, %v1122_v25  ;;  %2041 = vmatprep.subr.msk.bf16.mxu0 %vm2040_vm2, %v2218_v22  ;;  %v1024_v62 = vpop.permute.xlu1 %1023  ;;  %vm2042_vm1 = vmpackc.low %vm1253_vm7, %vm1251_vm13  ;;  %v1029_v56 = vpop.permute.xlu0 %1028 }
 0x144   : > { %vm1247_vm3 = vcmp.le.f32.partialorder %v1183_v49, 1.0  ;;  %vm1248_vm4 = vcmp.le.f32.partialorder %v1184_v60, 1.0  ;;  %vm1249_vm9 = vcmp.le.f32.partialorder %v1185_v58, 1.0  ;;  %v1115_v4 = vsub.f32 %v1024_v62, %v2819_v38  ;;  %2043 = vmatpush2.bf16.msk.msra.mxu0 %vm2042_vm1, %v2218_v22 }
 0x145   : > { %vm1250_vm0 = vcmp.le.f32.partialorder %v1186_v13, 1.0  ;;  %v1116_v36 = vsub.f32 %v1024_v62, %v2826_v5  ;;  %v1117_v11 = vsub.f32 %v1029_v56, %v2819_v38  ;;  %v1118_v30 = vsub.f32 %v1029_v56, %v2826_v5  ;;  %vm2046_vm8 = vmpackc.low %vm1249_vm9, %vm1247_vm3 }
 0x146   : > { %v1179_v7 = vand.u32 2147483647, %v1115_v4  ;;  %vm2044_vm10 = vmpackc.low %vm1250_vm0, %vm1248_vm4 }
 0x147   : > { %v1180_v3 = vand.u32 2147483647, %v1116_v36  ;;  %v1181_v32 = vand.u32 2147483647, %v1117_v11  ;;  %v1182_v44 = vand.u32 2147483647, %v1118_v30  ;;  %2045 = vmatprep.subr.msk.bf16.mxu0 %vm2044_vm10, %v2218_v22  ;;  %v1014_v57 = vpop.permute.xlu1 %1013  ;;  %v1019_v9 = vpop.permute.xlu0 %1018 }
 0x148   : > { %vm1243_vm13 = vcmp.le.f32.partialorder %v1179_v7, 1.0  ;;  %v1111_v52 = vsub.f32 %v1014_v57, %v2819_v38  ;;  %v1112_v51 = vsub.f32 %v1014_v57, %v2826_v5  ;;  %2047 = vmatpush2.bf16.msk.msra.mxu0 %vm2046_vm8, %v2218_v22  ;;  %v1113_v15 = vsub.f32 %v1019_v9, %v2819_v38 }
 0x149   : > { %vm1244_vm7 = vcmp.le.f32.partialorder %v1180_v3, 1.0  ;;  %vm1245_vm2 = vcmp.le.f32.partialorder %v1181_v32, 1.0  ;;  %vm1246_vm1 = vcmp.le.f32.partialorder %v1182_v44, 1.0  ;;  %v1114_v17 = vsub.f32 %v1019_v9, %v2826_v5 }
 0x14a   : > { %v1175_v54 = vand.u32 2147483647, %v1111_v52  ;;  %v1176_v33 = vand.u32 2147483647, %v1112_v51  ;;  %v1177_v50 = vand.u32 2147483647, %v1113_v15  ;;  %vm2048_vm3 = vmpackc.low %vm1246_vm1, %vm1244_vm7 }
 0x14b   : > { %v1178_v55 = vand.u32 2147483647, %v1114_v17  ;;  %2049 = vmatprep.subr.msk.bf16.mxu0 %vm2048_vm3, %v2218_v22  ;;  %v1004_v0 = vpop.permute.xlu1 %1003  ;;  %vm2050_vm4 = vmpackc.low %vm1245_vm2, %vm1243_vm13  ;;  %v1009_v63 = vpop.permute.xlu0 %1008  ;;  %v369_v3 = vshra.s32 %v2364_v27, 6  ;;  %v368_v32 = vshra.s32 %v2359_v19, 6  ;;  %v285_v57 = vshra.s32 %v2364_v27, 3 }
 0x14c   : > { %vm1239_vm9 = vcmp.le.f32.partialorder %v1175_v54, 1.0  ;;  %vm1240_vm0 = vcmp.le.f32.partialorder %v1176_v33, 1.0  ;;  %vm1241_vm8 = vcmp.le.f32.partialorder %v1177_v50, 1.0  ;;  %v1107_v1 = vsub.f32 %v1004_v0, %v2819_v38  ;;  %2051 = vmatpush2.bf16.msk.msra.mxu0 %vm2050_vm4, %v2218_v22 }
 0x14d   : > { %vm1242_vm10 = vcmp.le.f32.partialorder %v1178_v55, 1.0  ;;  %v1108_v23 = vsub.f32 %v1004_v0, %v2826_v5  ;;  %v1109_v61 = vsub.f32 %v1009_v63, %v2819_v38  ;;  %v1110_v28 = vsub.f32 %v1009_v63, %v2826_v5  ;;  %vm2054_vm7 = vmpackc.low %vm1241_vm8, %vm1239_vm9 }
 0x14e   : > { %v1171_v45 = vand.u32 2147483647, %v1107_v1  ;;  %vm2052_vm1 = vmpackc.low %vm1242_vm10, %vm1240_vm0  ;;  %v3047_v52 = vand.u32 1, %v285_v57 }
 0x14f   : > { %v1172_v34 = vand.u32 2147483647, %v1108_v23  ;;  %v1173_v41 = vand.u32 2147483647, %v1109_v61  ;;  %v1174_v46 = vand.u32 2147483647, %v1110_v28  ;;  %2053 = vmatprep.subr.msk.bf16.mxu0 %vm2052_vm1, %v2218_v22  ;;  %v994_v8 = vpop.permute.xlu1 %993  ;;  %v999_v14 = vpop.permute.xlu0 %998 }
 0x150   : > { %vm1235_vm13 = vcmp.le.f32.partialorder %v1171_v45, 1.0  ;;  %v1103_v39 = vsub.f32 %v994_v8, %v2819_v38  ;;  %v1104_v12 = vsub.f32 %v994_v8, %v2826_v5  ;;  %2055 = vmatpush2.bf16.msk.msra.mxu0 %vm2054_vm7, %v2218_v22  ;;  %v1105_v43 = vsub.f32 %v999_v14, %v2819_v38 }
 0x151   : > { %vm1236_vm2 = vcmp.le.f32.partialorder %v1172_v34, 1.0  ;;  %vm1237_vm3 = vcmp.le.f32.partialorder %v1173_v41, 1.0  ;;  %vm1238_vm4 = vcmp.le.f32.partialorder %v1174_v46, 1.0  ;;  %v1106_v31 = vsub.f32 %v999_v14, %v2826_v5 }
 0x152   : > { %v1167_v47 = vand.u32 2147483647, %v1103_v39  ;;  %v1168_v37 = vand.u32 2147483647, %v1104_v12  ;;  %v1169_v40 = vand.u32 2147483647, %v1105_v43  ;;  %vm2056_vm9 = vmpackc.low %vm1238_vm4, %vm1236_vm2  ;;  %vm3029_vm4 = vcmp.eq.s32.totalorder %v368_v32, %v2307_v6 }
 0x153   : > { %v1170_v53 = vand.u32 2147483647, %v1106_v31  ;;  %2057 = vmatprep.subr.msk.bf16.mxu0 %vm2056_vm9, %v2218_v22  ;;  %vm2058_vm0 = vmpackc.low %vm1237_vm3, %vm1235_vm13  ;;  %v256_v38 = vshra.s32 %v2359_v19, 2  ;;  %v257_v5 = vshra.s32 %v2364_v27, 2  ;;  %vm264_vm13 = vcmp.lt.s32.totalorder %v2359_v19, 124 }
 0x154   : > { %vm1231_vm8 = vcmp.le.f32.partialorder %v1167_v47, 1.0  ;;  %vm1232_vm10 = vcmp.le.f32.partialorder %v1168_v37, 1.0  ;;  %vm1233_vm1 = vcmp.le.f32.partialorder %v1169_v40, 1.0  ;;  %2059 = vmatpush2.bf16.msk.msra.mxu0 %vm2058_vm0, %v2218_v22  ;;  %vm271_vm2 = vcmp.lt.s32.totalorder %v2359_v19, 4  ;;  %vm2066_vm0 = vmpackc.low %vm3029_vm4, %vm3029_vm4 }
 0x155   : > { %vm1234_vm7 = vcmp.le.f32.partialorder %v1170_v53, 1.0  ;;  %vm2062_vm6 = vmpackc.low %vm1233_vm1, %vm1231_vm8  ;;  %v2993_v48 = vand.u32 1, %v256_v38  ;;  %v2995_v35 = vand.u32 1, %v257_v5  ;;  %vm292_vm8 = vcmp.lt.s32.totalorder %v2359_v19, 120 }
 0x156   : > { %vm2060_vm5 = vmpackc.low %vm1234_vm7, %vm1232_vm10  ;;  %vm299_vm10 = vcmp.lt.s32.totalorder %v2359_v19, 8  ;;  %vm3310_vm7 = vcmp.eq.s32.totalorder %v3047_v52, 0  ;;  %v312_v41 = vshra.s32 %v2359_v19, 4  ;;  %v313_v46 = vshra.s32 %v2364_v27, 4 }
 0x157   : > { %2061 = vmatprep.subr.msk.bf16.mxu0 %vm2060_vm5, %v2218_v22  ;;  %vm274_vm3 = vcmp.eq.s32.totalorder %v2993_v48, 0  ;;  %vm275_vm5 = vcmp.eq.s32.totalorder %v2995_v35, 0 }
 0x158   : > { %2063 = vmatpush2.bf16.msk.msra.mxu0 %vm2062_vm6, %v2218_v22  ;;  %vm3022_vm6 = vcmp.eq.s32.totalorder %v369_v3, %v2307_v6  ;;  %v3079_v8 = vand.u32 1, %v312_v41  ;;  %v3081_v14 = vand.u32 1, %v313_v46 }
 0x159   : > { %vm2064_vm9 = vmpackc.low %vm3022_vm6, %vm3022_vm6 }
 0x15a   : > { %2065 = vmatprep.mubr.msk.bf16.mxu0 %vm2064_vm9, %v2218_v22  ;;  %vm3315_vm9 = vcmp.lt.s32.totalorder %v2359_v19, 112 }
 0x15b   : > { %2067 = vmatmul.mubr.msk.bf16.vlgmr.msra.gmra.mxu0 %vm2066_vm0, %v2218_v22  ;;  %vm3314_vm0 = vcmp.lt.s32.totalorder %v2359_v19, 16 }
 0x191   : > { %v261_v25 = vpop.permute.xlu1 %260  ;;  %v263_v49 = vpop.permute.xlu0 %262 }
 0x192   : > { %v265_v13 = vsel %vm264_vm13, %v261_v25, %v263_v49  ;;  %v266_v62 = vsel %vm264_vm13, %v263_v49, %v261_v25 }
 0x195   : > { %v268_v60 = vpop.permute.xlu1 %267  ;;  %v270_v58 = vpop.permute.xlu0 %269 }
 0x196   : > { %v272_v56 = vsel %vm271_vm2, %v268_v60, %v270_v58  ;;  %v273_v4 = vsel %vm271_vm2, %v270_v58, %v268_v60  ;;  %v340_v58 = vshra.s32 %v2359_v19, 5 }
 0x197   : > { %v280_v36 = vsel %vm274_vm3, %v265_v13, %v273_v4  ;;  %v281_v11 = vsel %vm275_vm5, %v266_v62, %v272_v56  ;;  %v341_v13 = vshra.s32 %v2364_v27, 5 }
 0x198   : > { %v282_v30 = vadd.f32 %v280_v36, %v2907_v24  ;;  %v283_v7 = vadd.f32 %v281_v11, %v2910_v26  ;;  %v284_v26 = vshra.s32 %v2359_v19, 3  ;;  %v3111_v36 = vand.u32 1, %v340_v58 }
 0x199   : > { %v3113_v11 = vand.u32 1, %v341_v13 }
 0x19a   : > { %288 = vrot.lane.b32.xlu1 %v282_v30, %s2221_s8  ;;  %290 = vrot.lane.b32.xlu0 %v283_v7, %s2221_s8  ;;  %v3045_v9 = vand.u32 1, %v284_v26 }
 0x19c   : > { %vm3311_vm1 = vcmp.eq.s32.totalorder %v3045_v9, 0 }
 0x19e   : > { %295 = vrot.lane.b32.xlu1 %v282_v30, %s2222_s14  ;;  %297 = vrot.lane.b32.xlu0 %v283_v7, %s2222_s14 }
 0x20c   : > { %v289_v51 = vpop.permute.xlu1 %288  ;;  %v291_v15 = vpop.permute.xlu0 %290 }
 0x20d   : > { %v293_v54 = vsel %vm292_vm8, %v289_v51, %v291_v15  ;;  %v294_v33 = vsel %vm292_vm8, %v291_v15, %v289_v51 }
 0x210   : > { %v296_v17 = vpop.permute.xlu1 %295  ;;  %v298_v22 = vpop.permute.xlu0 %297 }
 0x211   : > { %v300_v50 = vsel %vm299_vm10, %v296_v17, %v298_v22  ;;  %v301_v55 = vsel %vm299_vm10, %v298_v22, %v296_v17 }
 0x212   : > { %v308_v0 = vsel %vm3311_vm1, %v293_v54, %v301_v55  ;;  %v309_v63 = vsel %vm3310_vm7, %v294_v33, %v300_v50  ;;  %vm3312_vm7 = vcmp.eq.s32.totalorder %v3079_v8, 0  ;;  %vm3313_vm1 = vcmp.eq.s32.totalorder %v3081_v14, 0 }
 0x213   : > { %v3065_v1 = vadd.f32 %v308_v0, %v282_v30  ;;  %v3067_v23 = vadd.f32 %v309_v63, %v283_v7 }
 0x215   : > { %316 = vrot.lane.b32.xlu1 %v3065_v1, %s2223_s16  ;;  %318 = vrot.lane.b32.xlu0 %v3067_v23, %s2223_s16 }
 0x219   : > { %323 = vrot.lane.b32.xlu1 %v3065_v1, %s2224_s17  ;;  %325 = vrot.lane.b32.xlu0 %v3067_v23, %s2224_s17 }
 0x21b   : > { %v1525_v61 = vpop.f32.mrf.mxu0 }
 0x21c   : > { %v1532_v60 = vsel %vm3029_vm4, %v1525_v61, 0.0  ;;  %vm348_vm4 = vcmp.lt.s32.totalorder %v2359_v19, 96 }
 0x21d   : > { %v1527_v28 = vpop.f32.mrf.mxu0 }
 0x21e   : > { %v1533_v62 = vsel %vm3022_vm6, %v1527_v28, 0.0  ;;  %vm1428_vm6 = vcmask 1040384  }
 0x21f   : > { %v1529_v45 = vpop.f32.mrf.mxu0 }
 0x221   : > { %v1530_v34 = vpop.f32.mrf.mxu0 }
 0x287   : > { %v317_v39 = vpop.permute.xlu1 %316  ;;  %v319_v12 = vpop.permute.xlu0 %318 }
 0x288   : > { %v321_v47 = vsel %vm3315_vm9, %v317_v39, %v319_v12  ;;  %v322_v37 = vsel %vm3315_vm9, %v319_v12, %v317_v39  ;;  %vm3316_vm9 = vcmp.eq.s32.totalorder %v3113_v11, 0 }
 0x28b   : > { %v324_v43 = vpop.permute.xlu1 %323  ;;  %v326_v31 = vpop.permute.xlu0 %325 }
 0x28c   : > { %v328_v40 = vsel %vm3314_vm0, %v324_v43, %v326_v31  ;;  %v329_v53 = vsel %vm3314_vm0, %v326_v31, %v324_v43  ;;  %vm358_vm0 = vcmp.eq.s32.totalorder %v3111_v36, 0 }
 0x28d   : > { %v336_v38 = vsel %vm3312_vm7, %v321_v47, %v329_v53  ;;  %v337_v5 = vsel %vm3313_vm1, %v322_v37, %v328_v40  ;;  %vm1534_vm7 = vcmask 1043456   ;;  %vm355_vm1 = vcmp.lt.s32.totalorder %v2359_v19, 32 }
 0x28e   : > { %v338_v25 = vadd.f32 %v336_v38, %v3065_v1  ;;  %v339_v49 = vadd.f32 %v337_v5, %v3067_v23  ;;  %v1535_v56 = vsel %vm1534_vm7, %v1532_v60, 0.0  ;;  %v1542_v4 = vsel %vm1534_vm7, %v1533_v62, 0.0 }
 0x28f   : > { %v1536_v30 = vrot.slane %v1535_v56, 4  ;;  %v1543_v57 = vrot.slane %v1542_v4, 4  ;;  %vm3331_vm7 = vcmp.eq.s32.totalorder %v2886_v42, 0 }
 0x290   : > { %344 = vrot.lane.b32.xlu1 %v338_v25, %s2225_s21  ;;  %346 = vrot.lane.b32.xlu0 %v339_v49, %s2225_s21 }
 0x291   : > { %v1537_v44 = vadd.f32 %v1536_v30, %v1535_v56  ;;  %v1544_v33 = vadd.f32 %v1543_v57, %v1542_v4  ;;  %v1429_v56 = vsel %vm1428_vm6, %v2322_v21, 0.0  ;;  %v1430_v4 = vsel %vm1428_vm6, %v2329_v29, 0.0 }
 0x292   : > { %v1431_v30 = vadd.f32 %v1430_v4, %v1429_v56  ;;  %v2149_v56 = vld [vmem:[%s2298_s25] sm:$0x3] }
 0x293   : > { %v1538_v61 = vrot.slane %v1537_v44, 2  ;;  %v1545_v28 = vrot.slane %v1544_v33, 2 }
 0x294   : > { %351 = vrot.lane.b32.xlu1 %v338_v25, %s2226_s22  ;;  %353 = vrot.lane.b32.xlu0 %v339_v49, %s2226_s22 }
 0x295   : > { %v1539_v45 = vadd.f32 %v1538_v61, %v1537_v44  ;;  %v1546_v34 = vadd.f32 %v1545_v28, %v1544_v33 }
 0x297   : > { %v1540_v41 = vrot.slane %v1539_v45, 1  ;;  %v1547_v46 = vrot.slane %v1546_v34, 1 }
 0x299   : > { %v1541_v39 = vadd.f32 %v1540_v41, %v1539_v45  ;;  %v1548_v43 = vadd.f32 %v1547_v46, %v1546_v34 }
 0x302   : > { %v345_v7 = vpop.permute.xlu1 %344  ;;  %v347_v26 = vpop.permute.xlu0 %346 }
 0x303   : > { %v349_v15 = vsel %vm348_vm4, %v345_v7, %v347_v26  ;;  %v350_v17 = vsel %vm348_vm4, %v347_v26, %v345_v7 }
 0x306   : > { %v352_v24 = vpop.permute.xlu1 %351  ;;  %v354_v51 = vpop.permute.xlu0 %353 }
 0x307   : > { %v356_v22 = vsel %vm355_vm1, %v352_v24, %v354_v51  ;;  %v357_v54 = vsel %vm355_vm1, %v354_v51, %v352_v24 }
 0x308   : > { %v364_v50 = vsel %vm358_vm0, %v349_v15, %v357_v54  ;;  %v365_v55 = vsel %vm3316_vm9, %v350_v17, %v356_v22  ;;  %vm3332_vm9 = vcmp.eq.s32.totalorder %v2888_v59, 0 }
 0x309   : > { %v3131_v0 = vadd.f32 %v364_v50, %v338_v25  ;;  %v3133_v63 = vadd.f32 %v365_v55, %v339_v49 }
 0x30b   : > { %2139 = vrcp.f32 %v3131_v0 }
 0x30c   : > { %2141 = vrcp.f32 %v3133_v63 }
 0x318   : > { %v2140_v12 = vpop.eup %2139 }
 0x319   : > { %v2142_v31 = vpop.eup %2141  ;;  %v1550_v47 = vmul.f32 %v2140_v12, %v1541_v39 }
 0x31a   : > { %v1552_v37 = vmul.f32 %v2142_v31, %v1548_v43 }
 0x31b   : > { %2143 = vlog2.f32 %v1550_v47 }
 0x31c   : > { %2145 = vlog2.f32 %v1552_v37 }
 0x328   : > { %v2144_v40 = vpop.eup %2143 }
 0x329   : > { %v2146_v53 = vpop.eup %2145  ;;  %v1554_v38 = vmul.f32 0.6931472, %v2144_v40 }
 0x32a   : > { %v1556_v5 = vmul.f32 0.6931472, %v2146_v53 }
 0x32b   : > { %v1558_v25 = vmul.f32 1.442695, %v1554_v38 }
 0x32c   : > { %v1559_v49 = vmul.f32 1.442695, %v1556_v5 }
 0x32d   : > { %v1560_v60 = vmul.f32 %v1558_v25, %v1550_v47 }
 0x32e   : > { %v1561_v58 = vmul.f32 %v1559_v49, %v1552_v37 }
 0x32f   : > { %v1564_v13 = vrot.slane %v1560_v60, 1 }
 0x330   : > { %v1565_v62 = vrot.slane %v1561_v58, 1 }
 0x331   : > { %1568 = vrot.lane.b32.xlu1 %v1564_v13, %s2215_s3 }
 0x332   : > { %1570 = vrot.lane.b32.xlu0 %v1565_v62, %s2215_s3  ;;  %s2074_s3 = sshll.u32 %s2266_s13, 5 }
 0x335   : > { %1574 = vrot.lane.b32.xlu1 %v1564_v13, %s2214_s30 }
 0x336   : > { %1576 = vrot.lane.b32.xlu0 %v1565_v62, %s2214_s30  ;;  %s1864_s30 = sshll.u32 %s147_s29, 1 }
 0x359   : > { %1432 = vadd.xlane.f32.xlu1 %v1431_v30 }
 0x3a3   : > { %v1569_v7 = vpop.permute.xlu1 %1568 }
 0x3a4   : > { %v1571_v26 = vpop.permute.xlu0 %1570 }
 0x3a5   : > { %v1572_v24 = vsel %vm208_vm12, %v1569_v7, %v1571_v26  ;;  %v1573_v51 = vsel %vm208_vm12, %v1571_v26, %v1569_v7 }
 0x3a7   : > { %v1575_v57 = vpop.permute.xlu1 %1574 }
 0x3a8   : > { %v1577_v44 = vpop.permute.xlu0 %1576 }
 0x3a9   : > { %v1578_v15 = vsel %vm215_vm11, %v1575_v57, %v1577_v44  ;;  %v1579_v21 = vsel %vm215_vm11, %v1577_v44, %v1575_v57  ;;  %vm3327_vm11 = vcmp.lt.s32.totalorder %v2359_v19, 126 }
 0x3aa   : > { %v1580_v29 = vsel %vm2594_vm14, %v1572_v24, %v1579_v21  ;;  %v1581_v17 = vsel %vm2600_vm15, %v1573_v51, %v1578_v15  ;;  %vm3328_vm12 = vmmov %vm3327_vm11  ;;  %vm3329_vm14 = vcmp.lt.s32.totalorder %v2359_v19, 2 }
 0x3ab   : > { %v1584_v22 = vrot.slane %v1580_v29, 7  ;;  %v1585_v54 = vrot.slane %v1581_v17, 7  ;;  %vm3330_vm15 = vmmov %vm3329_vm14 }
 0x3ad   : > { %v1588_v33 = vadd.f32 %v1584_v22, %v1560_v60  ;;  %v1589_v55 = vadd.f32 %v1585_v54, %v1561_v58 }
 0x3af   : > { %v1592_v50 = vrot.slane %v1588_v33, 1  ;;  %v1593_v61 = vrot.slane %v1589_v55, 1 }
 0x3b1   : > { %1596 = vrot.lane.b32.xlu0 %v1592_v50, %s2216_s4 }
 0x3b5   : > { %1598 = vrot.lane.b32.xlu0 %v1593_v61, %s2216_s4  ;;  %s149_s4 = scalar_lea.vmem [#allocation2], %s1864_s30 }
 0x3b9   : > { %1602 = vrot.lane.b32.xlu0 %v1592_v50, %s2217_s5 }
 0x3bd   : > { %1604 = vrot.lane.b32.xlu0 %v1593_v61, %s2217_s5  ;;  %s1789_s5 = sshll.u32 %s149_s4, 4  ;;  %s1790_s5 = int_to_ptr.vmem [resolvable:$true] %s1789_s5 }
 0x3e2   : > { %v1433_v28 = vpop.xlane.xlu1 %1432 }
 0x3e3   : > { %v1434_v16 = vrot.slane %v1433_v28, 4 }
 0x3e5   : > { %v1435_v45 = vadd.f32 %v1434_v16, %v1433_v28 }
 0x3e7   : > { %v1436_v34 = vrot.slane %v1435_v45, 2 }
 0x3e9   : > { %v1437_v20 = vadd.f32 %v1436_v34, %v1435_v45 }
 0x3eb   : > { %v1438_v41 = vrot.slane %v1437_v20, 1 }
 0x3ed   : > { %v1439_v46 = vadd.f32 %v1438_v41, %v1437_v20 }
 0x3ef   : > { %2075 = vpush %v1439_v46 }
 0x420   : > { %s2076_s23 = spop %2075 }
 0x421   : > { %s1441_s24 = smul.f32 0.00390625, %s2076_s23 }
 0x423   : > { %v1597_v39 = vpop.permute.xlu0 %1596  ;;  %v1442_v42 = vstv %s1441_s24 }
 0x424   : > { %v1443_v59 = vsub.f32 %v2149_v56, %v1442_v42 }
 0x426   : > { %v1444_v4 = vmul.f32 %v1443_v59, %v1443_v59 }
 0x427   : > { %v1599_v12 = vpop.permute.xlu0 %1598 }
 0x428   : > { %v1600_v47 = vsel %vm3327_vm11, %v1597_v39, %v1599_v12  ;;  %v1601_v37 = vsel %vm3328_vm12, %v1599_v12, %v1597_v39  ;;  %v1449_v30 = vrot.slane %v1444_v4, %v2312_v10  ;;  %v1453_v7 = vrot.slane %v1444_v4, %v2318_v18 }
 0x429   : > { %vm3339_vm11 = vcmp.eq.s32.totalorder %v3079_v8, 0  ;;  %vm3340_vm12 = vcmp.eq.s32.totalorder %v3081_v14, 0  ;;  %v371_v8 = vand.u32 1, %v369_v3  ;;  %v370_v14 = vand.u32 1, %v368_v32 }
 0x42a   : > { %v1456_v26 = vsel %vm1428_vm6, %v1449_v30, 0.0  ;;  %v1457_v57 = vsel %vm1428_vm6, %v1453_v7, 0.0 }
 0x42b   : > { %v1603_v43 = vpop.permute.xlu0 %1602  ;;  %v1458_v44 = vadd.f32 %v1457_v57, %v1456_v26 }
 0x42f   : > { %v1605_v31 = vpop.permute.xlu0 %1604 }
 0x430   : > { %v1606_v40 = vsel %vm3329_vm14, %v1603_v43, %v1605_v31  ;;  %v1607_v53 = vsel %vm3330_vm15, %v1605_v31, %v1603_v43  ;;  %vm376_vm14 = vcmp.lt.s32.totalorder %v2359_v19, 64  ;;  %vm380_vm15 = vcmp.eq.s32.totalorder %v371_v8, 0 }
 0x431   : > { %v1608_v38 = vsel %vm3331_vm7, %v1600_v47, %v1607_v53  ;;  %v1609_v5 = vsel %vm3332_vm9, %v1601_v37, %v1606_v40  ;;  %vm3337_vm9 = vcmp.lt.s32.totalorder %v2359_v19, 16  ;;  %vm379_vm7 = vcmp.eq.s32.totalorder %v370_v14, 0 }
 0x432   : > { %v1612_v25 = vrot.slane %v1608_v38, 7  ;;  %v1613_v49 = vrot.slane %v1609_v5, 7  ;;  %vm3338_vm6 = vmmov %vm3337_vm9 }
 0x434   : > { %v1616_v60 = vadd.f32 %v1612_v25, %v1588_v33  ;;  %v1617_v13 = vadd.f32 %v1613_v49, %v1589_v55 }
 0x436   : > { %v1620_v58 = vrot.slane %v1616_v60, 1  ;;  %v1621_v62 = vrot.slane %v1617_v13, 1 }
 0x438   : > { %1624 = vrot.lane.b32.xlu0 %v1620_v58, %s2219_s6 }
 0x43c   : > { %1626 = vrot.lane.b32.xlu0 %v1621_v62, %s2219_s6 }
 0x440   : > { %1630 = vrot.lane.b32.xlu0 %v1620_v58, %s2220_s7 }
 0x444   : > { %1632 = vrot.lane.b32.xlu0 %v1621_v62, %s2220_s7 }
 0x463   : > { %1459 = vadd.xlane.f32.xlu0 %v1458_v44 }
 0x4aa   : > { %v1625_v24 = vpop.permute.xlu0 %1624 }
 0x4ae   : > { %v1627_v51 = vpop.permute.xlu0 %1626 }
 0x4af   : > { %v1628_v29 = vsel %vm264_vm13, %v1625_v24, %v1627_v51  ;;  %v1629_v17 = vsel %vm264_vm13, %v1627_v51, %v1625_v24 }
 0x4b2   : > { %v1631_v15 = vpop.permute.xlu0 %1630 }
 0x4b6   : > { %v1633_v21 = vpop.permute.xlu0 %1632 }
 0x4b7   : > { %v1634_v10 = vsel %vm271_vm2, %v1631_v15, %v1633_v21  ;;  %v1635_v18 = vsel %vm271_vm2, %v1633_v21, %v1631_v15 }
 0x4b8   : > { %v1636_v22 = vsel %vm274_vm3, %v1628_v29, %v1635_v18  ;;  %v1637_v54 = vsel %vm275_vm5, %v1629_v17, %v1634_v10  ;;  %vm3333_vm3 = vcmp.eq.s32.totalorder %v3045_v9, 0  ;;  %vm3334_vm5 = vcmp.eq.s32.totalorder %v3047_v52, 0 }
 0x4b9   : > { %v1640_v33 = vrot.slane %v1636_v22, 7  ;;  %v1641_v50 = vrot.slane %v1637_v54, 7 }
 0x4bb   : > { %v1644_v55 = vadd.f32 %v1640_v33, %v1616_v60  ;;  %v1645_v28 = vadd.f32 %v1641_v50, %v1617_v13 }
 0x4bd   : > { %v1648_v61 = vrot.slane %v1644_v55, 1  ;;  %v1649_v16 = vrot.slane %v1645_v28, 1 }
 0x4bf   : > { %1652 = vrot.lane.b32.xlu1 %v1648_v61, %s2221_s8 }
 0x4c3   : > { %1654 = vrot.lane.b32.xlu1 %v1649_v16, %s2221_s8  ;;  %s1787_s8 = scalar_lea.hbm %s3305_s2, %s2074_s3 }
 0x4c7   : > { %1658 = vrot.lane.b32.xlu1 %v1648_v61, %s2222_s14 }
 0x4cb   : > { %1660 = vrot.lane.b32.xlu1 %v1649_v16, %s2222_s14  ;;  %s1775_s14 = scalar_lea.sflag [#allocation3], %s147_s29 }
 0x4ec   : > { %v1460_v45 = vpop.xlane.xlu0 %1459 }
 0x4ed   : > { %v1461_v48 = vrot.slane %v1460_v45, 4 }
 0x4ef   : > { %v1462_v34 = vadd.f32 %v1461_v48, %v1460_v45 }
 0x4f1   : > { %v1463_v20 = vrot.slane %v1462_v34, 2 }
 0x4f3   : > { %v1464_v35 = vadd.f32 %v1463_v20, %v1462_v34 }
 0x4f5   : > { %v1465_v41 = vrot.slane %v1464_v35, 1 }
 0x4f7   : > { %v1466_v46 = vadd.f32 %v1465_v41, %v1464_v35 }
 0x4f9   : > { %2077 = vpush %v1466_v46 }
 0x52a   : > { %s2078_s25 = spop %2077 }
 0x52b   : > { %s1468_s26 = smul.f32 0.003921569, %s2078_s25 }
 0x52d   : > { %v1469_v39 = vstv %s1468_s26 }
 0x52e   : > { %2147 = vrsqrt.f32 %v1469_v39  ;;  %vm1472_vm13 = vcmp.eq.f32.partialorder %v1469_v39, inf  ;;  %v1475_v37 = vand.u32 2147483648, %v1469_v39  ;;  %vm1474_vm2 = vcmp.eq.f32.partialorder %v1469_v39, 0.0 }
 0x531   : > { %v1653_v12 = vpop.permute.xlu1 %1652 }
 0x535   : > { %v1655_v43 = vpop.permute.xlu1 %1654 }
 0x536   : > { %v1656_v53 = vsel %vm292_vm8, %v1653_v12, %v1655_v43  ;;  %v1657_v5 = vsel %vm292_vm8, %v1655_v43, %v1653_v12  ;;  %vm3335_vm8 = vcmp.lt.s32.totalorder %v2359_v19, 112  ;;  %v1426_v19 = vmul.f32 0.0625, %v3065_v1 }
 0x539   : > { %v1659_v31 = vpop.permute.xlu1 %1658 }
 0x53b   : > { %v2148_v47 = vpop.eup %2147 }
 0x53c   : > { %v1471_v40 = vmul.f32 %v2148_v47, %v1469_v39 }
 0x53d   : > { %v1661_v38 = vpop.permute.xlu1 %1660 }
 0x53e   : > { %v1662_v25 = vsel %vm299_vm10, %v1659_v31, %v1661_v38  ;;  %v1663_v49 = vsel %vm299_vm10, %v1661_v38, %v1659_v31  ;;  %v1473_v60 = vsel %vm1472_vm13, %v1469_v39, %v1471_v40  ;;  %vm3336_vm10 = vmmov %vm3335_vm8  ;;  %vm3341_vm13 = vcmp.eq.s32.totalorder %v3113_v11, 0 }
 0x53f   : > { %v1664_v58 = vsel %vm3333_vm3, %v1656_v53, %v1663_v49  ;;  %v1665_v13 = vsel %vm3334_vm5, %v1657_v5, %v1662_v25  ;;  %v1476_v62 = vsel %vm1474_vm2, %v1475_v37, %v1473_v60  ;;  %v2228_v5 = vmov 1966171168  }
 0x540   : > { %v1668_v42 = vrot.slane %v1664_v58, 7  ;;  %v1669_v56 = vrot.slane %v1665_v13, 7  ;;  %2079 = vpush %v1476_v62  ;;  %v1754_v25 = vunpack.c.l.s4 %v2228_v5  ;;  %v1424_v49 = vmul.f32 0.015625, %v3131_v0 }
 0x541   : > { %v1425_v60 = vmul.f32 0.015625, %v3133_v63  ;;  %v1427_v11 = vmul.f32 0.0625, %v3067_v23  ;;  %vm1771_vm5 = vcmp.lt.s32.totalorder %v160_v2, 256 }
 0x542   : > { %v1672_v59 = vadd.f32 %v1668_v42, %v1644_v55  ;;  %v1673_v4 = vadd.f32 %v1669_v56, %v1645_v28 }
 0x543   : > { %v1739_v1 = vrot.slane %v1427_v11, 7 }
 0x544   : > { %v1676_v30 = vrot.slane %v1672_v59, 1  ;;  %v1677_v7 = vrot.slane %v1673_v4, 1 }
 0x546   : > { %1680 = vrot.lane.b32.xlu1 %v1676_v30, %s2223_s16  ;;  %1682 = vrot.lane.b32.xlu0 %v1677_v7, %s2223_s16  ;;  %s2150_s16 = scalar_lea.vmem %s1790_s5, 32 }
 0x547   : > { %p2151_p11 = scmp.ne.s32.totalorder %s1790_s5, %s2150_s16 }
 0x549   : > { %p2152_p12 = pnand %p2151_p11, %p2283_p5 }
 0x54a   : > { %1686 = vrot.lane.b32.xlu1 %v1676_v30, %s2224_s17 }
 0x54b   : > { %p2153_p13 = pneg %p2152_p12 }
 0x54e   : > { %1688 = vrot.lane.b32.xlu1 %v1677_v7, %s2224_s17  ;;  %s2229_s17 = smov [#allocation2]  }
 0x54f   : > { %s2154_s13 = sshll.u32 %s2229_s17, 4  ;;  %s2155_s13 = int_to_ptr.vmem [resolvable:$false] %s2154_s13 }
 0x550   : > { %p2157_p0 = scmp.lt.s32.totalorder %s1790_s5, %s2155_s13 }
 0x552   : > { %372 = vrot.lane.b32.xlu1 %v3131_v0, %s2227_s27 }
 0x556   : > { %374 = vrot.lane.b32.xlu1 %v3133_v63, %s2227_s27 }
 0x571   : > { %s2080_s28 = spop %2079 }
 0x572   : > { %v1478_v3 = vstv %s2080_s28 }
 0x573   : > { %vm3251_vm2 = vcmp.ge.f32.partialorder %v1478_v3, 0.2 }
 0x5b8   : > { %v1681_v9 = vpop.permute.xlu1 %1680  ;;  %v1683_v26 = vpop.permute.xlu0 %1682 }
 0x5b9   : > { %v1684_v44 = vsel %vm3335_vm8, %v1681_v9, %v1683_v26  ;;  %v1685_v24 = vsel %vm3336_vm10, %v1683_v26, %v1681_v9 }
 0x5bc   : > { %v1687_v52 = vpop.permute.xlu1 %1686 }
 0x5c0   : > { %v1689_v57 = vpop.permute.xlu1 %1688 }
 0x5c1   : > { %v1690_v51 = vsel %vm3337_vm9, %v1687_v52, %v1689_v57  ;;  %v1691_v15 = vsel %vm3338_vm6, %v1689_v57, %v1687_v52 }
 0x5c2   : > { %v1692_v21 = vsel %vm3339_vm11, %v1684_v44, %v1691_v15  ;;  %v1693_v29 = vsel %vm3340_vm12, %v1685_v24, %v1690_v51 }
 0x5c3   : > { %v1696_v17 = vrot.slane %v1692_v21, 7  ;;  %v1697_v10 = vrot.slane %v1693_v29, 7 }
 0x5c4   : > { %v373_v50 = vpop.permute.xlu1 %372 }
 0x5c5   : > { %v1701_v18 = vadd.f32 %v1697_v10, %v1673_v4  ;;  %v1700_v22 = vadd.f32 %v1696_v17, %v1672_v59  ;;  %v1755_v59 = vunpack.c.0.s8 %v1754_v25 }
 0x5c7   : > { %v1705_v54 = vrot.slane %v1701_v18, 1  ;;  %v1704_v33 = vrot.slane %v1700_v22, 1  ;;  %v1758_v30 = vsub.s32 %v1755_v59, %v2307_v6 }
 0x5c8   : > { %v375_v55 = vpop.permute.xlu1 %374 }
 0x5c9   : > { %1710 = vrot.lane.b32.xlu0 %v1705_v54, %s2225_s21  ;;  %1708 = vrot.lane.b32.xlu1 %v1704_v33, %s2225_s21  ;;  %v377_v61 = vsel %vm376_vm14, %v373_v50, %v375_v55  ;;  %v378_v28 = vsel %vm376_vm14, %v375_v55, %v373_v50  ;;  %s2156_s21 = scalar_lea.vmem %s2155_s13, 64 }
 0x5ca   : > { %v385_v16 = vsel %vm379_vm7, %v377_v61, %v378_v28  ;;  %v386_v45 = vsel %vm380_vm15, %v378_v28, %v377_v61  ;;  %p2158_p1 = scmp.lt.s32.totalorder %s2156_s21, %s2150_s16 }
 0x5cb   : > { %v387_v48 = vadd.f32 %v385_v16, %v3131_v0  ;;  %v388_v34 = vadd.f32 %v386_v45, %v3133_v63  ;;  %v1738_v0 = vrot.slane %v1426_v19, 7 }
 0x5cc   : > { %p2159_p2 = por %p2158_p1, %p2157_p0 }
 0x5cd   : > { %1716 = vrot.lane.b32.xlu0 %v1705_v54, %s2226_s22  ;;  %1714 = vrot.lane.b32.xlu1 %v1704_v33, %s2226_s22  ;;  %v389_v27 = vadd.f32 %v388_v34, %v387_v48 }
 0x5ce   : > { %p2160_p3 = pnand %p2159_p2, %p2153_p13 }
 0x5cf   : > { %v1423_v31 = vmul.f32 0.00390625, %v389_v27 }
 0x5d1   : > { %v1481_v13 = vsel %vm3251_vm2, %v1424_v49, %v1423_v31  ;;  %v1482_v62 = vsel %vm3251_vm2, %v1425_v60, %v1423_v31 }
 0x5d2   : > { %v1744_v4 = vrot.slane %v1481_v13, 7  ;;  %v1745_v63 = vrot.slane %v1482_v62, 7 }
 0x63b   : > { %v1711_v20 = vpop.permute.xlu0 %1710  ;;  %v1709_v35 = vpop.permute.xlu1 %1708 }
 0x63c   : > { %v1712_v46 = vsel %vm348_vm4, %v1709_v35, %v1711_v20  ;;  %v1713_v39 = vsel %vm348_vm4, %v1711_v20, %v1709_v35 }
 0x63f   : > { %v1717_v41 = vpop.permute.xlu0 %1716  ;;  %v1715_v32 = vpop.permute.xlu1 %1714 }
 0x640   : > { %v1718_v12 = vsel %vm355_vm1, %v1715_v32, %v1717_v41  ;;  %v1719_v43 = vsel %vm355_vm1, %v1717_v41, %v1715_v32 }
 0x641   : > { %v1720_v47 = vsel %vm358_vm0, %v1712_v46, %v1719_v43  ;;  %v1721_v37 = vsel %vm3341_vm13, %v1713_v39, %v1718_v12 }
 0x642   : > { %v1724_v53 = vrot.slane %v1720_v47, 7  ;;  %v1725_v38 = vrot.slane %v1721_v37, 7 }
 0x644   : > { %v1728_v36 = vadd.f32 %v1724_v53, %v1700_v22  ;;  %v1729_v58 = vadd.f32 %v1725_v38, %v1701_v18 }
 0x646   : > { %v1730_v42 = vsub.f32 0.0, %v1728_v36  ;;  %v1731_v56 = vsub.f32 0.0, %v1729_v58 }
 0x648   : > { %vm1732_vm1 = vcmp.ge.f32.partialorder %v1730_v42, 0.2  ;;  %vm1733_vm0 = vcmp.ge.f32.partialorder %v1731_v56, 0.2 }
 0x649   : > { %vm1734_vm4 = vmand %vm3251_vm2, %vm1732_vm1 }
 0x64a   : > { %vm1735_vm3 = vmand %vm3251_vm2, %vm1733_vm0  ;;  %v1748_v23 = vsel %vm1734_vm4, %v1738_v0, %v1744_v4 }
 0x64b   : > { %v1749_v7 = vsel %vm1735_vm3, %v1739_v1, %v1745_v63 }
 0x64c   : > { %v1752_v9 = vcombine.low %v1748_v23, %v1749_v7 }
 0x64e   : > { %v1759_v52 = vrot.slane %v1752_v9, %v1758_v30 }
 0x650   : > { %v1760_v26 = vcombine.high %v1759_v52, %v1759_v52 }
 0x652   : > { %v1767_v57 = vrot.slane %v1760_v26, %v1758_v30 }
 0x654   : > { %1773 = vst.msk [vmem:[%s149_s4] sm:$0x3] %vm1771_vm5, %v1767_v57 }
 0x655   : > { %2163 = shalt.err (!%p2160_p3)
}
 0x656   : > { %s2164_s22 = scalar_lea.hbm %s1787_s8, 32  ;;  %s2168_s25 = scalar_lea.hbm %s3305_s2, 64 }
 0x657   : > { %p2165_p4 = scmp.ne.s32.totalorder %s1787_s8, %s2164_s22  ;;  %p2169_p9 = scmp.lt.s32.totalorder %s1787_s8, %s3305_s2 }
 0x658   : > { %p2170_p10 = scmp.lt.s32.totalorder %s2168_s25, %s2164_s22 }
 0x659   : > { %p2166_p7 = pnand %p2165_p4, %p2283_p5 }
 0x65a   : > { %p2171_p11 = por %p2170_p10, %p2169_p9 }
 0x65b   : > { %p2167_p8 = pneg %p2166_p7 }
 0x65d   : > { %p2172_p12 = pnand %p2171_p11, %p2167_p8 }
 0x65f   : > { %2175 = shalt.err (!%p2172_p12)
}
 0x660   : > { %2081 = dma.vmem_to_hbm [thread:$0]  (%p2283_p5), %s1790_s5, 32, %s1787_s8, %s1775_s14  }
 0x661 PF: > { %p2087_p13 = scmp.ge.s32.totalorder %s2210_s12, 2  ;;  %s1801_s28 = sand.u32 1, %s2198_s9  }
 0x662   : > { %s1802_s29 = scalar_lea.sflag [#allocation3], %s1801_s28 }
 0x663   : > { %p2084_p0 = pnand %p2087_p13, %p2287_p6 }
 0x665   : > { %p2085_p1 = pneg %p2084_p0 }
 0x667   : > { %2193 = dma.done.wait (%p2085_p1), %s1802_s29, 32  }
 0x668   : > { %2195 = vsyncadd (%p2085_p1), %s1802_s29, 4294967264  ;;  %p12_p2 = scmp.ge.s32.totalorder %s2270_s15, 4   ;;  %s3344_s9 = smov %s2202_s10 }
 0x669   : > { %s3345_s10 = smov %s2206_s11  ;;  %s3346_s11 = smov %s2281_s18 }
 0x66a   : > { %s3347_s12 = smov %s2270_s15  ;;  %14 = sbr.rel (!%p12_p2) target bundleno = 3 (0x3), region = 66 }
 0x66f   :  { %1807 = vsyncpa [#allocation3], 1 }
 0x670   :  { %1809 = vsyncpa [#allocation3 + $0x1], 1 }

</bundles_post_ra>
